<compile_context>
chip_gen: v5e
topology: v5e:2x2
jax: 0.10.0
libtpu: 0.0.40
codegen_flags: <defaults>
</compile_context>

<pallas_src>
import math
import functools

import jax
import jax.numpy as jnp
from jax.experimental import pallas as pl
from jax.experimental.pallas import tpu as pltpu


# ---------------------------------------------------------------------------
# Kernel 1: fused Q/K/V projection -> head-major (B, nh, S, hd) tensors.
# ---------------------------------------------------------------------------
def _qkv_proj_kernel(x_ref, wq_ref, bq_ref, wk_ref, bk_ref, wv_ref, bv_ref,
                     q_ref, k_ref, v_ref,
                     *, num_heads, head_dim, scale, compute_dtype):
    x = x_ref[0].astype(compute_dtype)                              # (ts, H)

    def proj(w_ref, b_ref):
        # Full-width (ts, H) @ (H, H) matmul: fills the MXU; f32 accumulation.
        return jnp.dot(x, w_ref[...],
                       preferred_element_type=jnp.float32) + b_ref[...]

    q = (proj(wq_ref, bq_ref) * scale).astype(compute_dtype)        # 1/sqrt(hd) folded into Q
    k = proj(wk_ref, bk_ref).astype(compute_dtype)
    v = proj(wv_ref, bv_ref).astype(compute_dtype)

    # Split heads along the minor dim (static lane slices; once per token tile,
    # not per (q-tile, kv-tile) pair).
    for h in range(num_heads):
        sl = slice(h * head_dim, (h + 1) * head_dim)
        q_ref[0, h] = q[:, sl]
        k_ref[0, h] = k[:, sl]
        v_ref[0, h] = v[:, sl]


# ---------------------------------------------------------------------------
# Kernel 2: flash attention (online softmax) + fused output projection.
# ---------------------------------------------------------------------------
def _flash_kernel(q_ref, k_ref, v_ref, wo_ref, bo_ref, out_ref,
                  m_sc, l_sc, acc_sc, ctx_sc,
                  *, num_heads, head_dim, head_group, compute_dtype):
    kv = pl.program_id(2)

    @pl.when(kv == 0)
    def _init():
        m_sc[...] = jnp.full(m_sc.shape, -jnp.inf, m_sc.dtype)
        l_sc[...] = jnp.zeros(l_sc.shape, l_sc.dtype)
        acc_sc[...] = jnp.zeros(acc_sc.shape, acc_sc.dtype)

    q_all = q_ref[0]                                                # (nh, tq, hd)
    k_all = k_ref[0]                                                # (nh, tk, hd)
    v_all = v_ref[0]                                                # (nh, tk, hd)

    # Online (flash) softmax, processed in static head groups to bound the
    # (g, tq, tk) f32 score/p transient (vreg/VMEM pressure on v7x).
    for g0 in range(0, num_heads, head_group):
        g1 = min(g0 + head_group, num_heads)
        q = q_all[g0:g1]
        k = k_all[g0:g1]
        v = v_all[g0:g1]

        s = jnp.einsum('hqd,hkd->hqk', q, k,
                       preferred_element_type=jnp.float32)          # (g, tq, tk) f32

        m_prev = m_sc[g0:g1]
        m_new = jnp.maximum(m_prev, jnp.max(s, axis=-1, keepdims=True))
        alpha = jnp.exp(m_prev - m_new)
        p = jnp.exp(s - m_new)                                      # f32 softmax math
        l_sc[g0:g1] = alpha * l_sc[g0:g1] + jnp.sum(p, axis=-1, keepdims=True)
        pv = jnp.einsum('hqk,hkd->hqd', p.astype(compute_dtype), v,
                        preferred_element_type=jnp.float32)         # (g, tq, hd) f32
        acc_sc[g0:g1] = alpha * acc_sc[g0:g1] + pv
        m_sc[g0:g1] = m_new

    @pl.when(kv == pl.num_programs(2) - 1)
    def _finalize():
        # Exact reciprocal: runs once per (batch, q-tile); cost negligible.
        inv_l = pl.reciprocal(l_sc[...], approx=False)              # (nh, tq, 1)
        # Lane-scatter per-head contexts into a (tq, H) scratch so the output
        # projection is one MXU matmul with K = H (not nh matmuls with K = hd).
        for h in range(num_heads):
            sl = slice(h * head_dim, (h + 1) * head_dim)
            ctx_sc[:, sl] = (acc_sc[h] * inv_l[h]).astype(ctx_sc.dtype)
        out = jnp.dot(ctx_sc[...], wo_ref[...],
                      preferred_element_type=jnp.float32) + bo_ref[...]
        out_ref[0] = out.astype(out_ref.dtype)


# ---------------------------------------------------------------------------
# Wrapper
# ---------------------------------------------------------------------------
def _pick_tile(s, target, mult):
    """Largest tile <= target dividing s, aligned to `mult` sublanes (dtype-aware)."""
    if s <= target:
        return s
    for t in range(min(target, s), mult - 1, -1):
        if s % t == 0 and t % mult == 0:
            return t
    return s


def _vmem_limit_bytes():
    # Generation-aware budget: ~85% of physical VMEM (v5e/v6e 128 MiB -> ~108 MiB,
    # v7x 64 MiB -> ~54 MiB). Safe 64 MiB fallback if the query is unavailable.
    try:
        cap = pltpu.get_tpu_info().vmem_capacity_bytes
    except Exception:
        cap = 64 * 1024 * 1024
    return max(32 * 1024 * 1024, int(cap * 0.85))


def _mha_forward(x, params, num_heads, *, compute_dtype, q_tile, kv_tile,
                 head_group, single_buffer_weights):
    B, S, H = x.shape
    head_dim = H // num_heads
    scale = 1.0 / math.sqrt(head_dim)
    out_dtype = x.dtype

    mult = 8 * (4 // jnp.dtype(compute_dtype).itemsize)   # 8 for f32, 16 for bf16
    tq = _pick_tile(S, q_tile, mult)
    tk = _pick_tile(S, kv_tile, mult)
    ts = _pick_tile(S, max(q_tile, kv_tile), mult)        # projection row tile
    hg = max(1, min(head_group, num_heads))
    vmem_limit = _vmem_limit_bytes()

    def wspec(shape):
        nd = len(shape)
        idx = lambda *_: (0,) * nd
        if single_buffer_weights:
            # Constant blocks are never re-fetched; single-buffer them to halve
            # their VMEM footprint (critical at large H under v7x's 64 MiB).
            return pl.BlockSpec(shape, idx, pipeline_mode=pl.Buffered(buffer_count=1))
        return pl.BlockSpec(shape, idx)

    # Weights in compute dtype (bf16 MXU operands), biases kept f32 (added
    # after the f32-accumulated matmul).
    wq = params["wq"].astype(compute_dtype); bq = params["bq"].astype(jnp.float32)
    wk = params["wk"].astype(compute_dtype); bk = params["bk"].astype(jnp.float32)
    wv = params["wv"].astype(compute_dtype); bv = params["bv"].astype(jnp.float32)
    wo = params["wo"].astype(compute_dtype); bo = params["bo"].astype(jnp.float32)
    x_c = x.astype(compute_dtype)

    # ---- stage 1: Q/K/V projection (each token projected exactly once) -----
    proj = pl.pallas_call(
        functools.partial(_qkv_proj_kernel, num_heads=num_heads,
                          head_dim=head_dim, scale=scale,
                          compute_dtype=compute_dtype),
        out_shape=tuple(jax.ShapeDtypeStruct((B, num_heads, S, head_dim),
                                             compute_dtype) for _ in range(3)),
        grid_spec=pltpu.PrefetchScalarGridSpec(
            num_scalar_prefetch=0,
            grid=(B, S // ts),
            in_specs=[
                pl.BlockSpec((1, ts, H), lambda b, si: (b, si, 0)),   # x rows
                wspec((H, H)), wspec((1, H)),                         # wq, bq
                wspec((H, H)), wspec((1, H)),                         # wk, bk
                wspec((H, H)), wspec((1, H)),                         # wv, bv
            ],
            out_specs=[
                pl.BlockSpec((1, num_heads, ts, head_dim),
                             lambda b, si: (b, 0, si, 0))
                for _ in range(3)
            ],
        ),
        compiler_params=pltpu.CompilerParams(
            dimension_semantics=("parallel", "parallel"),
            vmem_limit_bytes=vmem_limit,
        ),
    )
    q, k, v = proj(x_c, wq, bq, wk, bk, wv, bv)

    # ---- stage 2: flash attention + output projection ----------------------
    flash = pl.pallas_call(
        functools.partial(_flash_kernel, num_heads=num_heads, head_dim=head_dim,
                          head_group=hg, compute_dtype=compute_dtype),
        out_shape=jax.ShapeDtypeStruct((B, S, H), out_dtype),
        grid_spec=pltpu.PrefetchScalarGridSpec(
            num_scalar_prefetch=0,
            grid=(B, S // tq, S // tk),
            in_specs=[
                pl.BlockSpec((1, num_heads, tq, head_dim),
                             lambda b, qi, ki: (b, 0, qi, 0)),        # Q tile
                pl.BlockSpec((1, num_heads, tk, head_dim),
                             lambda b, qi, ki: (b, 0, ki, 0)),        # K tile
                pl.BlockSpec((1, num_heads, tk, head_dim),
                             lambda b, qi, ki: (b, 0, ki, 0)),        # V tile
                wspec((H, H)),                                        # wo
                wspec((1, H)),                                        # bo
            ],
            out_specs=pl.BlockSpec((1, tq, H), lambda b, qi, ki: (b, qi, 0)),
            scratch_shapes=[
                pltpu.VMEM((num_heads, tq, 1), jnp.float32),          # m (running max)
                pltpu.VMEM((num_heads, tq, 1), jnp.float32),          # l (running sum)
                pltpu.VMEM((num_heads, tq, head_dim), jnp.float32),   # acc
                pltpu.VMEM((tq, H), compute_dtype),                   # ctx (heads merged)
            ],
        ),
        compiler_params=pltpu.CompilerParams(
            dimension_semantics=("parallel", "parallel", "arbitrary"),
            vmem_limit_bytes=vmem_limit,
        ),
    )
    return flash(q, k, v, wo, bo)


def multi_head_attention(x, params, num_heads, *, compute_dtype=jnp.bfloat16,
                         q_tile=256, kv_tile=256, head_group=8):
    """x: (B, S, H). params: wq,bq,wk,bk,wv,bv,wo,bo with y = x @ W + b layout.

    compute_dtype: MXU operand dtype (bf16 default; softmax/accumulation stay f32).
    q_tile/kv_tile: 256 default (MXU-native on v6e/v7x); use 128 on v5e, 512 on
    v6e (128 MiB VMEM) when H allows. head_group caps the f32 score transient.
    """
    kwargs = dict(compute_dtype=compute_dtype, q_tile=q_tile, kv_tile=kv_tile,
                  head_group=head_group)
    try:
        return _mha_forward(x, params, num_heads, single_buffer_weights=True, **kwargs)
    except Exception:
        # TODO(synk): pl.Buffered(1) single-buffering of constant weight blocks is
        # rejected on this JAX build; fall back to default double-buffering.
        return _mha_forward(x, params, num_heads, single_buffer_weights=False, **kwargs)


# ---------------------------------------------------------------------------
# Pure-JAX reference mirroring the PyTorch forward (eval mode, no mask).
# ---------------------------------------------------------------------------
def _reference(x, params, num_heads):
    B, S, H = x.shape
    hd = H // num_heads
    q = x @ params["wq"] + params["bq"][0]
    k = x @ params["wk"] + params["bk"][0]
    v = x @ params["wv"] + params["bv"][0]
    q = q.reshape(B, S, num_heads, hd).transpose(0, 2, 1, 3)
    k = k.reshape(B, S, num_heads, hd).transpose(0, 2, 1, 3)
    v = v.reshape(B, S, num_heads, hd).transpose(0, 2, 1, 3)
    attn = jnp.einsum("bhqd,bhkd->bhqk", q, k) / math.sqrt(hd)
    attn = jax.nn.softmax(attn, axis=-1)
    out = jnp.einsum("bhqk,bhkd->bhqd", attn, v)
    out = out.transpose(0, 2, 1, 3).reshape(B, S, H)
    return out @ params["wo"] + params["bo"][0]


if __name__ == "__main__":
    # Small shapes consistent with the module: batch=2, seq=8, hidden=32, heads=4.
    batch, seq_len, hidden_dim, num_heads = 2, 8, 32, 4

    key = jax.random.PRNGKey(0)
    keys = jax.random.split(key, 9)

    def init_linear(kw, kb, fan_in, fan_out):
        bound = 1.0 / math.sqrt(fan_in)
        w = jax.random.uniform(kw, (fan_in, fan_out), jnp.float32, -bound, bound)
        b = jax.random.uniform(kb, (1, fan_out), jnp.float32, -bound, bound)
        return w, b

    wq, bq = init_linear(keys[0], keys[1], hidden_dim, hidden_dim)
    wk, bk = init_linear(keys[2], keys[3], hidden_dim, hidden_dim)
    wv, bv = init_linear(keys[4], keys[5], hidden_dim, hidden_dim)
    wo, bo = init_linear(keys[6], keys[7], hidden_dim, hidden_dim)
    params = dict(wq=wq, bq=bq, wk=wk, bk=bk, wv=wv, bv=bv, wo=wo, bo=bo)

    x = jax.random.normal(keys[8], (batch, seq_len, hidden_dim), jnp.float32)

    ref = _reference(x, params, num_heads)

    # f32-MXU path: tight check (scale folded into Q; exact reciprocal).
    out_f32 = jax.block_until_ready(
        multi_head_attention(x, params, num_heads, compute_dtype=jnp.float32))
    assert out_f32.shape == (batch, seq_len, hidden_dim)
    assert jnp.allclose(out_f32, ref, atol=5e-3, rtol=5e-3), \
        "f32 kernel mismatch vs reference"

    # Default path: bf16 MXU operands, f32 softmax/accumulation, f32 output.
    out_bf = jax.block_until_ready(multi_head_attention(x, params, num_heads))
    assert out_bf.shape == (batch, seq_len, hidden_dim)
    assert out_bf.dtype == x.dtype
    assert jnp.allclose(out_bf, ref, atol=5e-2, rtol=5e-2), \
        "bf16 kernel mismatch vs reference"

    print("KERNEL_OK")
</pallas_src>

<mosaic_0001>
module attributes {stable_mosaic.version = 11 : i64} {
  func.func @_qkv_proj_kernel(%arg0: i32, %arg1: i32, %arg2: memref<1x8x32xf32, #tpu.memory_space<vmem>>, %arg3: memref<32x32xf32, #tpu.memory_space<vmem>>, %arg4: memref<1x32xf32, #tpu.memory_space<vmem>>, %arg5: memref<32x32xf32, #tpu.memory_space<vmem>>, %arg6: memref<1x32xf32, #tpu.memory_space<vmem>>, %arg7: memref<32x32xf32, #tpu.memory_space<vmem>>, %arg8: memref<1x32xf32, #tpu.memory_space<vmem>>, %arg9: memref<1x4x8x8xf32, #tpu.memory_space<vmem>>, %arg10: memref<1x4x8x8xf32, #tpu.memory_space<vmem>>, %arg11: memref<1x4x8x8xf32, #tpu.memory_space<vmem>>) attributes {dimension_semantics = [#tpu.dimension_semantics<parallel>, #tpu.dimension_semantics<parallel>], iteration_bounds = array<i64: 2, 1>, scalar_prefetch = 0 : i64, scratch_operands = 0 : i64, tpu.core_type = #tpu.core_type<tc>, window_params = [{transform_indices = @transform_0, window_bounds = array<i64: 1, 8, 32>}, {pipeline_mode = #tpu.pipeline_mode<synchronous>, transform_indices = @transform_1, window_bounds = array<i64: 32, 32>}, {pipeline_mode = #tpu.pipeline_mode<synchronous>, transform_indices = @transform_2, window_bounds = array<i64: 1, 32>}, {pipeline_mode = #tpu.pipeline_mode<synchronous>, transform_indices = @transform_3, window_bounds = array<i64: 32, 32>}, {pipeline_mode = #tpu.pipeline_mode<synchronous>, transform_indices = @transform_4, window_bounds = array<i64: 1, 32>}, {pipeline_mode = #tpu.pipeline_mode<synchronous>, transform_indices = @transform_5, window_bounds = array<i64: 32, 32>}, {pipeline_mode = #tpu.pipeline_mode<synchronous>, transform_indices = @transform_6, window_bounds = array<i64: 1, 32>}, {transform_indices = @transform_7, window_bounds = array<i64: 1, 4, 8, 8>}, {transform_indices = @transform_8, window_bounds = array<i64: 1, 4, 8, 8>}, {transform_indices = @transform_9, window_bounds = array<i64: 1, 4, 8, 8>}]} {
    %c0 = arith.constant 0 : index
    %c0_0 = arith.constant 0 : index
    %c0_1 = arith.constant 0 : index
    %0 = vector.load %arg2[%c0, %c0_0, %c0_1] : memref<1x8x32xf32, #tpu.memory_space<vmem>>, vector<1x8x32xf32>
    %1 = vector.shape_cast %0 : vector<1x8x32xf32> to vector<8x32xf32>
    %c0_2 = arith.constant 0 : index
    %c0_3 = arith.constant 0 : index
    %2 = vector.load %arg3[%c0_2, %c0_3] : memref<32x32xf32, #tpu.memory_space<vmem>>, vector<32x32xf32>
    %cst = arith.constant dense<0.000000e+00> : vector<8x32xf32>
    %3 = tpu.matmul %1, %2, %cst {dimension_numbers = #tpu.dot_dimension_numbers<[1], [0], [0], [1], [0, 0, 1, 1], [], []>} : vector<8x32xf32>, vector<32x32xf32>, vector<8x32xf32> -> vector<8x32xf32>
    %c0_4 = arith.constant 0 : index
    %c0_5 = arith.constant 0 : index
    %4 = vector.load %arg4[%c0_4, %c0_5] : memref<1x32xf32, #tpu.memory_space<vmem>>, vector<1x32xf32>
    %5 = vector.broadcast %4 : vector<1x32xf32> to vector<8x32xf32>
    %6 = arith.addf %3, %5 : vector<8x32xf32>
    %cst_6 = arith.constant 0.353553385 : f32
    %7 = vector.broadcast %cst_6 : f32 to vector<8x32xf32>
    %8 = arith.mulf %6, %7 : vector<8x32xf32>
    %c0_7 = arith.constant 0 : index
    %c0_8 = arith.constant 0 : index
    %9 = vector.load %arg5[%c0_7, %c0_8] : memref<32x32xf32, #tpu.memory_space<vmem>>, vector<32x32xf32>
    %cst_9 = arith.constant dense<0.000000e+00> : vector<8x32xf32>
    %10 = tpu.matmul %1, %9, %cst_9 {dimension_numbers = #tpu.dot_dimension_numbers<[1], [0], [0], [1], [0, 0, 1, 1], [], []>} : vector<8x32xf32>, vector<32x32xf32>, vector<8x32xf32> -> vector<8x32xf32>
    %c0_10 = arith.constant 0 : index
    %c0_11 = arith.constant 0 : index
    %11 = vector.load %arg6[%c0_10, %c0_11] : memref<1x32xf32, #tpu.memory_space<vmem>>, vector<1x32xf32>
    %12 = vector.broadcast %11 : vector<1x32xf32> to vector<8x32xf32>
    %13 = arith.addf %10, %12 : vector<8x32xf32>
    %c0_12 = arith.constant 0 : index
    %c0_13 = arith.constant 0 : index
    %14 = vector.load %arg7[%c0_12, %c0_13] : memref<32x32xf32, #tpu.memory_space<vmem>>, vector<32x32xf32>
    %cst_14 = arith.constant dense<0.000000e+00> : vector<8x32xf32>
    %15 = tpu.matmul %1, %14, %cst_14 {dimension_numbers = #tpu.dot_dimension_numbers<[1], [0], [0], [1], [0, 0, 1, 1], [], []>} : vector<8x32xf32>, vector<32x32xf32>, vector<8x32xf32> -> vector<8x32xf32>
    %c0_15 = arith.constant 0 : index
    %c0_16 = arith.constant 0 : index
    %16 = vector.load %arg8[%c0_15, %c0_16] : memref<1x32xf32, #tpu.memory_space<vmem>>, vector<1x32xf32>
    %17 = vector.broadcast %16 : vector<1x32xf32> to vector<8x32xf32>
    %18 = arith.addf %15, %17 : vector<8x32xf32>
    %19 = vector.extract_strided_slice %8 {offsets = [0, 0], sizes = [8, 8], strides = [1, 1]} : vector<8x32xf32> to vector<8x8xf32>
    %c0_17 = arith.constant 0 : index
    %c0_18 = arith.constant 0 : index
    %c0_19 = arith.constant 0 : index
    %c0_20 = arith.constant 0 : index
    %20 = vector.load %arg9[%c0_17, %c0_18, %c0_19, %c0_20] : memref<1x4x8x8xf32, #tpu.memory_space<vmem>>, vector<1x1x8x8xf32>
    %21 = vector.shape_cast %20 : vector<1x1x8x8xf32> to vector<8x8xf32>
    %22 = vector.shape_cast %19 : vector<8x8xf32> to vector<1x1x8x8xf32>
    tpu.vector_store %arg9[%c0_17, %c0_18, %c0_19, %c0_20], %22 {strides = array<i32>} : memref<1x4x8x8xf32, #tpu.memory_space<vmem>>, vector<1x1x8x8xf32>,
    %23 = vector.extract_strided_slice %13 {offsets = [0, 0], sizes = [8, 8], strides = [1, 1]} : vector<8x32xf32> to vector<8x8xf32>
    %c0_21 = arith.constant 0 : index
    %c0_22 = arith.constant 0 : index
    %c0_23 = arith.constant 0 : index
    %c0_24 = arith.constant 0 : index
    %24 = vector.load %arg10[%c0_21, %c0_22, %c0_23, %c0_24] : memref<1x4x8x8xf32, #tpu.memory_space<vmem>>, vector<1x1x8x8xf32>
    %25 = vector.shape_cast %24 : vector<1x1x8x8xf32> to vector<8x8xf32>
    %26 = vector.shape_cast %23 : vector<8x8xf32> to vector<1x1x8x8xf32>
    tpu.vector_store %arg10[%c0_21, %c0_22, %c0_23, %c0_24], %26 {strides = array<i32>} : memref<1x4x8x8xf32, #tpu.memory_space<vmem>>, vector<1x1x8x8xf32>,
    %27 = vector.extract_strided_slice %18 {offsets = [0, 0], sizes = [8, 8], strides = [1, 1]} : vector<8x32xf32> to vector<8x8xf32>
    %c0_25 = arith.constant 0 : index
    %c0_26 = arith.constant 0 : index
    %c0_27 = arith.constant 0 : index
    %c0_28 = arith.constant 0 : index
    %28 = vector.load %arg11[%c0_25, %c0_26, %c0_27, %c0_28] : memref<1x4x8x8xf32, #tpu.memory_space<vmem>>, vector<1x1x8x8xf32>
    %29 = vector.shape_cast %28 : vector<1x1x8x8xf32> to vector<8x8xf32>
    %30 = vector.shape_cast %27 : vector<8x8xf32> to vector<1x1x8x8xf32>
    tpu.vector_store %arg11[%c0_25, %c0_26, %c0_27, %c0_28], %30 {strides = array<i32>} : memref<1x4x8x8xf32, #tpu.memory_space<vmem>>, vector<1x1x8x8xf32>,
    %31 = vector.extract_strided_slice %8 {offsets = [0, 8], sizes = [8, 8], strides = [1, 1]} : vector<8x32xf32> to vector<8x8xf32>
    %c0_29 = arith.constant 0 : index
    %c1 = arith.constant 1 : index
    %c0_30 = arith.constant 0 : index
    %c0_31 = arith.constant 0 : index
    %32 = vector.load %arg9[%c0_29, %c1, %c0_30, %c0_31] : memref<1x4x8x8xf32, #tpu.memory_space<vmem>>, vector<1x1x8x8xf32>
    %33 = vector.shape_cast %32 : vector<1x1x8x8xf32> to vector<8x8xf32>
    %34 = vector.shape_cast %31 : vector<8x8xf32> to vector<1x1x8x8xf32>
    tpu.vector_store %arg9[%c0_29, %c1, %c0_30, %c0_31], %34 {strides = array<i32>} : memref<1x4x8x8xf32, #tpu.memory_space<vmem>>, vector<1x1x8x8xf32>,
    %35 = vector.extract_strided_slice %13 {offsets = [0, 8], sizes = [8, 8], strides = [1, 1]} : vector<8x32xf32> to vector<8x8xf32>
    %c0_32 = arith.constant 0 : index
    %c1_33 = arith.constant 1 : index
    %c0_34 = arith.constant 0 : index
    %c0_35 = arith.constant 0 : index
    %36 = vector.load %arg10[%c0_32, %c1_33, %c0_34, %c0_35] : memref<1x4x8x8xf32, #tpu.memory_space<vmem>>, vector<1x1x8x8xf32>
    %37 = vector.shape_cast %36 : vector<1x1x8x8xf32> to vector<8x8xf32>
    %38 = vector.shape_cast %35 : vector<8x8xf32> to vector<1x1x8x8xf32>
    tpu.vector_store %arg10[%c0_32, %c1_33, %c0_34, %c0_35], %38 {strides = array<i32>} : memref<1x4x8x8xf32, #tpu.memory_space<vmem>>, vector<1x1x8x8xf32>,
    %39 = vector.extract_strided_slice %18 {offsets = [0, 8], sizes = [8, 8], strides = [1, 1]} : vector<8x32xf32> to vector<8x8xf32>
    %c0_36 = arith.constant 0 : index
    %c1_37 = arith.constant 1 : index
    %c0_38 = arith.constant 0 : index
    %c0_39 = arith.constant 0 : index
    %40 = vector.load %arg11[%c0_36, %c1_37, %c0_38, %c0_39] : memref<1x4x8x8xf32, #tpu.memory_space<vmem>>, vector<1x1x8x8xf32>
    %41 = vector.shape_cast %40 : vector<1x1x8x8xf32> to vector<8x8xf32>
    %42 = vector.shape_cast %39 : vector<8x8xf32> to vector<1x1x8x8xf32>
    tpu.vector_store %arg11[%c0_36, %c1_37, %c0_38, %c0_39], %42 {strides = array<i32>} : memref<1x4x8x8xf32, #tpu.memory_space<vmem>>, vector<1x1x8x8xf32>,
    %43 = vector.extract_strided_slice %8 {offsets = [0, 16], sizes = [8, 8], strides = [1, 1]} : vector<8x32xf32> to vector<8x8xf32>
    %c0_40 = arith.constant 0 : index
    %c2 = arith.constant 2 : index
    %c0_41 = arith.constant 0 : index
    %c0_42 = arith.constant 0 : index
    %44 = vector.load %arg9[%c0_40, %c2, %c0_41, %c0_42] : memref<1x4x8x8xf32, #tpu.memory_space<vmem>>, vector<1x1x8x8xf32>
    %45 = vector.shape_cast %44 : vector<1x1x8x8xf32> to vector<8x8xf32>
    %46 = vector.shape_cast %43 : vector<8x8xf32> to vector<1x1x8x8xf32>
    tpu.vector_store %arg9[%c0_40, %c2, %c0_41, %c0_42], %46 {strides = array<i32>} : memref<1x4x8x8xf32, #tpu.memory_space<vmem>>, vector<1x1x8x8xf32>,
    %47 = vector.extract_strided_slice %13 {offsets = [0, 16], sizes = [8, 8], strides = [1, 1]} : vector<8x32xf32> to vector<8x8xf32>
    %c0_43 = arith.constant 0 : index
    %c2_44 = arith.constant 2 : index
    %c0_45 = arith.constant 0 : index
    %c0_46 = arith.constant 0 : index
    %48 = vector.load %arg10[%c0_43, %c2_44, %c0_45, %c0_46] : memref<1x4x8x8xf32, #tpu.memory_space<vmem>>, vector<1x1x8x8xf32>
    %49 = vector.shape_cast %48 : vector<1x1x8x8xf32> to vector<8x8xf32>
    %50 = vector.shape_cast %47 : vector<8x8xf32> to vector<1x1x8x8xf32>
    tpu.vector_store %arg10[%c0_43, %c2_44, %c0_45, %c0_46], %50 {strides = array<i32>} : memref<1x4x8x8xf32, #tpu.memory_space<vmem>>, vector<1x1x8x8xf32>,
    %51 = vector.extract_strided_slice %18 {offsets = [0, 16], sizes = [8, 8], strides = [1, 1]} : vector<8x32xf32> to vector<8x8xf32>
    %c0_47 = arith.constant 0 : index
    %c2_48 = arith.constant 2 : index
    %c0_49 = arith.constant 0 : index
    %c0_50 = arith.constant 0 : index
    %52 = vector.load %arg11[%c0_47, %c2_48, %c0_49, %c0_50] : memref<1x4x8x8xf32, #tpu.memory_space<vmem>>, vector<1x1x8x8xf32>
    %53 = vector.shape_cast %52 : vector<1x1x8x8xf32> to vector<8x8xf32>
    %54 = vector.shape_cast %51 : vector<8x8xf32> to vector<1x1x8x8xf32>
    tpu.vector_store %arg11[%c0_47, %c2_48, %c0_49, %c0_50], %54 {strides = array<i32>} : memref<1x4x8x8xf32, #tpu.memory_space<vmem>>, vector<1x1x8x8xf32>,
    %55 = vector.extract_strided_slice %8 {offsets = [0, 24], sizes = [8, 8], strides = [1, 1]} : vector<8x32xf32> to vector<8x8xf32>
    %c0_51 = arith.constant 0 : index
    %c3 = arith.constant 3 : index
    %c0_52 = arith.constant 0 : index
    %c0_53 = arith.constant 0 : index
    %56 = vector.load %arg9[%c0_51, %c3, %c0_52, %c0_53] : memref<1x4x8x8xf32, #tpu.memory_space<vmem>>, vector<1x1x8x8xf32>
    %57 = vector.shape_cast %56 : vector<1x1x8x8xf32> to vector<8x8xf32>
    %58 = vector.shape_cast %55 : vector<8x8xf32> to vector<1x1x8x8xf32>
    tpu.vector_store %arg9[%c0_51, %c3, %c0_52, %c0_53], %58 {strides = array<i32>} : memref<1x4x8x8xf32, #tpu.memory_space<vmem>>, vector<1x1x8x8xf32>,
    %59 = vector.extract_strided_slice %13 {offsets = [0, 24], sizes = [8, 8], strides = [1, 1]} : vector<8x32xf32> to vector<8x8xf32>
    %c0_54 = arith.constant 0 : index
    %c3_55 = arith.constant 3 : index
    %c0_56 = arith.constant 0 : index
    %c0_57 = arith.constant 0 : index
    %60 = vector.load %arg10[%c0_54, %c3_55, %c0_56, %c0_57] : memref<1x4x8x8xf32, #tpu.memory_space<vmem>>, vector<1x1x8x8xf32>
    %61 = vector.shape_cast %60 : vector<1x1x8x8xf32> to vector<8x8xf32>
    %62 = vector.shape_cast %59 : vector<8x8xf32> to vector<1x1x8x8xf32>
    tpu.vector_store %arg10[%c0_54, %c3_55, %c0_56, %c0_57], %62 {strides = array<i32>} : memref<1x4x8x8xf32, #tpu.memory_space<vmem>>, vector<1x1x8x8xf32>,
    %63 = vector.extract_strided_slice %18 {offsets = [0, 24], sizes = [8, 8], strides = [1, 1]} : vector<8x32xf32> to vector<8x8xf32>
    %c0_58 = arith.constant 0 : index
    %c3_59 = arith.constant 3 : index
    %c0_60 = arith.constant 0 : index
    %c0_61 = arith.constant 0 : index
    %64 = vector.load %arg11[%c0_58, %c3_59, %c0_60, %c0_61] : memref<1x4x8x8xf32, #tpu.memory_space<vmem>>, vector<1x1x8x8xf32>
    %65 = vector.shape_cast %64 : vector<1x1x8x8xf32> to vector<8x8xf32>
    %66 = vector.shape_cast %63 : vector<8x8xf32> to vector<1x1x8x8xf32>
    tpu.vector_store %arg11[%c0_58, %c3_59, %c0_60, %c0_61], %66 {strides = array<i32>} : memref<1x4x8x8xf32, #tpu.memory_space<vmem>>, vector<1x1x8x8xf32>,
    return
  }
  func.func @transform_0(%arg0: i32, %arg1: i32) -> (i32, i32, i32) {
    %c0_i32 = arith.constant 0 : i32
    %c0_i32_0 = arith.constant 0 : i32
    return %arg0, %arg1, %c0_i32 : i32, i32, i32
  }
  func.func @transform_1(%arg0: i32, %arg1: i32) -> (i32, i32) {
    %c0_i32 = arith.constant 0 : i32
    %c0_i32_0 = arith.constant 0 : i32
    %c0_i32_1 = arith.constant 0 : i32
    return %c0_i32, %c0_i32_0 : i32, i32
  }
  func.func @transform_2(%arg0: i32, %arg1: i32) -> (i32, i32) {
    %c0_i32 = arith.constant 0 : i32
    %c0_i32_0 = arith.constant 0 : i32
    %c0_i32_1 = arith.constant 0 : i32
    return %c0_i32, %c0_i32_0 : i32, i32
  }
  func.func @transform_3(%arg0: i32, %arg1: i32) -> (i32, i32) {
    %c0_i32 = arith.constant 0 : i32
    %c0_i32_0 = arith.constant 0 : i32
    %c0_i32_1 = arith.constant 0 : i32
    return %c0_i32, %c0_i32_0 : i32, i32
  }
  func.func @transform_4(%arg0: i32, %arg1: i32) -> (i32, i32) {
    %c0_i32 = arith.constant 0 : i32
    %c0_i32_0 = arith.constant 0 : i32
    %c0_i32_1 = arith.constant 0 : i32
    return %c0_i32, %c0_i32_0 : i32, i32
  }
  func.func @transform_5(%arg0: i32, %arg1: i32) -> (i32, i32) {
    %c0_i32 = arith.constant 0 : i32
    %c0_i32_0 = arith.constant 0 : i32
    %c0_i32_1 = arith.constant 0 : i32
    return %c0_i32, %c0_i32_0 : i32, i32
  }
  func.func @transform_6(%arg0: i32, %arg1: i32) -> (i32, i32) {
    %c0_i32 = arith.constant 0 : i32
    %c0_i32_0 = arith.constant 0 : i32
    %c0_i32_1 = arith.constant 0 : i32
    return %c0_i32, %c0_i32_0 : i32, i32
  }
  func.func @transform_7(%arg0: i32, %arg1: i32) -> (i32, i32, i32, i32) {
    %c0_i32 = arith.constant 0 : i32
    %c0_i32_0 = arith.constant 0 : i32
    %c0_i32_1 = arith.constant 0 : i32
    return %arg0, %c0_i32, %arg1, %c0_i32_0 : i32, i32, i32, i32
  }
  func.func @transform_8(%arg0: i32, %arg1: i32) -> (i32, i32, i32, i32) {
    %c0_i32 = arith.constant 0 : i32
    %c0_i32_0 = arith.constant 0 : i32
    %c0_i32_1 = arith.constant 0 : i32
    return %arg0, %c0_i32, %arg1, %c0_i32_0 : i32, i32, i32, i32
  }
  func.func @transform_9(%arg0: i32, %arg1: i32) -> (i32, i32, i32, i32) {
    %c0_i32 = arith.constant 0 : i32
    %c0_i32_0 = arith.constant 0 : i32
    %c0_i32_1 = arith.constant 0 : i32
    return %arg0, %c0_i32, %arg1, %c0_i32_0 : i32, i32, i32, i32
  }
}

module attributes {stable_mosaic.version = 11 : i64} {
  func.func @_qkv_proj_kernel(%arg0: i32, %arg1: i32, %arg2: memref<1x8x32xf32, #tpu.memory_space<vmem>>, %arg3: memref<32x32xf32, #tpu.memory_space<vmem>>, %arg4: memref<1x32xf32, #tpu.memory_space<vmem>>, %arg5: memref<32x32xf32, #tpu.memory_space<vmem>>, %arg6: memref<1x32xf32, #tpu.memory_space<vmem>>, %arg7: memref<32x32xf32, #tpu.memory_space<vmem>>, %arg8: memref<1x32xf32, #tpu.memory_space<vmem>>, %arg9: memref<1x4x8x8xf32, #tpu.memory_space<vmem>>, %arg10: memref<1x4x8x8xf32, #tpu.memory_space<vmem>>, %arg11: memref<1x4x8x8xf32, #tpu.memory_space<vmem>>) attributes {dimension_semantics = [#tpu.dimension_semantics<parallel>, #tpu.dimension_semantics<parallel>], iteration_bounds = array<i64: 2, 1>, scalar_prefetch = 0 : i64, scratch_operands = 0 : i64, tpu.core_type = #tpu.core_type<tc>, window_params = [{transform_indices = @transform_0, window_bounds = array<i64: 1, 8, 32>}, {pipeline_mode = #tpu.pipeline_mode<synchronous>, transform_indices = @transform_1, window_bounds = array<i64: 32, 32>}, {pipeline_mode = #tpu.pipeline_mode<synchronous>, transform_indices = @transform_2, window_bounds = array<i64: 1, 32>}, {pipeline_mode = #tpu.pipeline_mode<synchronous>, transform_indices = @transform_3, window_bounds = array<i64: 32, 32>}, {pipeline_mode = #tpu.pipeline_mode<synchronous>, transform_indices = @transform_4, window_bounds = array<i64: 1, 32>}, {pipeline_mode = #tpu.pipeline_mode<synchronous>, transform_indices = @transform_5, window_bounds = array<i64: 32, 32>}, {pipeline_mode = #tpu.pipeline_mode<synchronous>, transform_indices = @transform_6, window_bounds = array<i64: 1, 32>}, {transform_indices = @transform_7, window_bounds = array<i64: 1, 4, 8, 8>}, {transform_indices = @transform_8, window_bounds = array<i64: 1, 4, 8, 8>}, {transform_indices = @transform_9, window_bounds = array<i64: 1, 4, 8, 8>}]} {
    %c0 = arith.constant 0 : index
    %c0_0 = arith.constant 0 : index
    %c0_1 = arith.constant 0 : index
    %0 = vector.load %arg2[%c0, %c0_0, %c0_1] : memref<1x8x32xf32, #tpu.memory_space<vmem>>, vector<1x8x32xf32>
    %1 = vector.shape_cast %0 : vector<1x8x32xf32> to vector<8x32xf32>
    %c0_2 = arith.constant 0 : index
    %c0_3 = arith.constant 0 : index
    %2 = vector.load %arg3[%c0_2, %c0_3] : memref<32x32xf32, #tpu.memory_space<vmem>>, vector<32x32xf32>
    %cst = arith.constant dense<0.000000e+00> : vector<8x32xf32>
    %3 = tpu.matmul %1, %2, %cst {dimension_numbers = #tpu.dot_dimension_numbers<[1], [0], [0], [1], [0, 0, 1, 1], [], []>} : vector<8x32xf32>, vector<32x32xf32>, vector<8x32xf32> -> vector<8x32xf32>
    %c0_4 = arith.constant 0 : index
    %c0_5 = arith.constant 0 : index
    %4 = vector.load %arg4[%c0_4, %c0_5] : memref<1x32xf32, #tpu.memory_space<vmem>>, vector<1x32xf32>
    %5 = vector.broadcast %4 : vector<1x32xf32> to vector<8x32xf32>
    %6 = arith.addf %3, %5 : vector<8x32xf32>
    %cst_6 = arith.constant 0.353553385 : f32
    %7 = vector.broadcast %cst_6 : f32 to vector<8x32xf32>
    %8 = arith.mulf %6, %7 : vector<8x32xf32>
    %c0_7 = arith.constant 0 : index
    %c0_8 = arith.constant 0 : index
    %9 = vector.load %arg5[%c0_7, %c0_8] : memref<32x32xf32, #tpu.memory_space<vmem>>, vector<32x32xf32>
    %cst_9 = arith.constant dense<0.000000e+00> : vector<8x32xf32>
    %10 = tpu.matmul %1, %9, %cst_9 {dimension_numbers = #tpu.dot_dimension_numbers<[1], [0], [0], [1], [0, 0, 1, 1], [], []>} : vector<8x32xf32>, vector<32x32xf32>, vector<8x32xf32> -> vector<8x32xf32>
    %c0_10 = arith.constant 0 : index
    %c0_11 = arith.constant 0 : index
    %11 = vector.load %arg6[%c0_10, %c0_11] : memref<1x32xf32, #tpu.memory_space<vmem>>, vector<1x32xf32>
    %12 = vector.broadcast %11 : vector<1x32xf32> to vector<8x32xf32>
    %13 = arith.addf %10, %12 : vector<8x32xf32>
    %c0_12 = arith.constant 0 : index
    %c0_13 = arith.constant 0 : index
    %14 = vector.load %arg7[%c0_12, %c0_13] : memref<32x32xf32, #tpu.memory_space<vmem>>, vector<32x32xf32>
    %cst_14 = arith.constant dense<0.000000e+00> : vector<8x32xf32>
    %15 = tpu.matmul %1, %14, %cst_14 {dimension_numbers = #tpu.dot_dimension_numbers<[1], [0], [0], [1], [0, 0, 1, 1], [], []>} : vector<8x32xf32>, vector<32x32xf32>, vector<8x32xf32> -> vector<8x32xf32>
    %c0_15 = arith.constant 0 : index
    %c0_16 = arith.constant 0 : index
    %16 = vector.load %arg8[%c0_15, %c0_16] : memref<1x32xf32, #tpu.memory_space<vmem>>, vector<1x32xf32>
    %17 = vector.broadcast %16 : vector<1x32xf32> to vector<8x32xf32>
    %18 = arith.addf %15, %17 : vector<8x32xf32>
    %19 = vector.extract_strided_slice %8 {offsets = [0, 0], sizes = [8, 8], strides = [1, 1]} : vector<8x32xf32> to vector<8x8xf32>
    %c0_17 = arith.constant 0 : index
    %c0_18 = arith.constant 0 : index
    %c0_19 = arith.constant 0 : index
    %c0_20 = arith.constant 0 : index
    %20 = vector.load %arg9[%c0_17, %c0_18, %c0_19, %c0_20] : memref<1x4x8x8xf32, #tpu.memory_space<vmem>>, vector<1x1x8x8xf32>
    %21 = vector.shape_cast %20 : vector<1x1x8x8xf32> to vector<8x8xf32>
    %22 = vector.shape_cast %19 : vector<8x8xf32> to vector<1x1x8x8xf32>
    tpu.vector_store %arg9[%c0_17, %c0_18, %c0_19, %c0_20], %22 {strides = array<i32>} : memref<1x4x8x8xf32, #tpu.memory_space<vmem>>, vector<1x1x8x8xf32>,
    %23 = vector.extract_strided_slice %13 {offsets = [0, 0], sizes = [8, 8], strides = [1, 1]} : vector<8x32xf32> to vector<8x8xf32>
    %c0_21 = arith.constant 0 : index
    %c0_22 = arith.constant 0 : index
    %c0_23 = arith.constant 0 : index
    %c0_24 = arith.constant 0 : index
    %24 = vector.load %arg10[%c0_21, %c0_22, %c0_23, %c0_24] : memref<1x4x8x8xf32, #tpu.memory_space<vmem>>, vector<1x1x8x8xf32>
    %25 = vector.shape_cast %24 : vector<1x1x8x8xf32> to vector<8x8xf32>
    %26 = vector.shape_cast %23 : vector<8x8xf32> to vector<1x1x8x8xf32>
    tpu.vector_store %arg10[%c0_21, %c0_22, %c0_23, %c0_24], %26 {strides = array<i32>} : memref<1x4x8x8xf32, #tpu.memory_space<vmem>>, vector<1x1x8x8xf32>,
    %27 = vector.extract_strided_slice %18 {offsets = [0, 0], sizes = [8, 8], strides = [1, 1]} : vector<8x32xf32> to vector<8x8xf32>
    %c0_25 = arith.constant 0 : index
    %c0_26 = arith.constant 0 : index
    %c0_27 = arith.constant 0 : index
    %c0_28 = arith.constant 0 : index
    %28 = vector.load %arg11[%c0_25, %c0_26, %c0_27, %c0_28] : memref<1x4x8x8xf32, #tpu.memory_space<vmem>>, vector<1x1x8x8xf32>
    %29 = vector.shape_cast %28 : vector<1x1x8x8xf32> to vector<8x8xf32>
    %30 = vector.shape_cast %27 : vector<8x8xf32> to vector<1x1x8x8xf32>
    tpu.vector_store %arg11[%c0_25, %c0_26, %c0_27, %c0_28], %30 {strides = array<i32>} : memref<1x4x8x8xf32, #tpu.memory_space<vmem>>, vector<1x1x8x8xf32>,
    %31 = vector.extract_strided_slice %8 {offsets = [0, 8], sizes = [8, 8], strides = [1, 1]} : vector<8x32xf32> to vector<8x8xf32>
    %c0_29 = arith.constant 0 : index
    %c1 = arith.constant 1 : index
    %c0_30 = arith.constant 0 : index
    %c0_31 = arith.constant 0 : index
    %32 = vector.load %arg9[%c0_29, %c1, %c0_30, %c0_31] : memref<1x4x8x8xf32, #tpu.memory_space<vmem>>, vector<1x1x8x8xf32>
    %33 = vector.shape_cast %32 : vector<1x1x8x8xf32> to vector<8x8xf32>
    %34 = vector.shape_cast %31 : vector<8x8xf32> to vector<1x1x8x8xf32>
    tpu.vector_store %arg9[%c0_29, %c1, %c0_30, %c0_31], %34 {strides = array<i32>} : memref<1x4x8x8xf32, #tpu.memory_space<vmem>>, vector<1x1x8x8xf32>,
    %35 = vector.extract_strided_slice %13 {offsets = [0, 8], sizes = [8, 8], strides = [1, 1]} : vector<8x32xf32> to vector<8x8xf32>
    %c0_32 = arith.constant 0 : index
    %c1_33 = arith.constant 1 : index
    %c0_34 = arith.constant 0 : index
    %c0_35 = arith.constant 0 : index
    %36 = vector.load %arg10[%c0_32, %c1_33, %c0_34, %c0_35] : memref<1x4x8x8xf32, #tpu.memory_space<vmem>>, vector<1x1x8x8xf32>
    %37 = vector.shape_cast %36 : vector<1x1x8x8xf32> to vector<8x8xf32>
    %38 = vector.shape_cast %35 : vector<8x8xf32> to vector<1x1x8x8xf32>
    tpu.vector_store %arg10[%c0_32, %c1_33, %c0_34, %c0_35], %38 {strides = array<i32>} : memref<1x4x8x8xf32, #tpu.memory_space<vmem>>, vector<1x1x8x8xf32>,
    %39 = vector.extract_strided_slice %18 {offsets = [0, 8], sizes = [8, 8], strides = [1, 1]} : vector<8x32xf32> to vector<8x8xf32>
    %c0_36 = arith.constant 0 : index
    %c1_37 = arith.constant 1 : index
    %c0_38 = arith.constant 0 : index
    %c0_39 = arith.constant 0 : index
    %40 = vector.load %arg11[%c0_36, %c1_37, %c0_38, %c0_39] : memref<1x4x8x8xf32, #tpu.memory_space<vmem>>, vector<1x1x8x8xf32>
    %41 = vector.shape_cast %40 : vector<1x1x8x8xf32> to vector<8x8xf32>
    %42 = vector.shape_cast %39 : vector<8x8xf32> to vector<1x1x8x8xf32>
    tpu.vector_store %arg11[%c0_36, %c1_37, %c0_38, %c0_39], %42 {strides = array<i32>} : memref<1x4x8x8xf32, #tpu.memory_space<vmem>>, vector<1x1x8x8xf32>,
    %43 = vector.extract_strided_slice %8 {offsets = [0, 16], sizes = [8, 8], strides = [1, 1]} : vector<8x32xf32> to vector<8x8xf32>
    %c0_40 = arith.constant 0 : index
    %c2 = arith.constant 2 : index
    %c0_41 = arith.constant 0 : index
    %c0_42 = arith.constant 0 : index
    %44 = vector.load %arg9[%c0_40, %c2, %c0_41, %c0_42] : memref<1x4x8x8xf32, #tpu.memory_space<vmem>>, vector<1x1x8x8xf32>
    %45 = vector.shape_cast %44 : vector<1x1x8x8xf32> to vector<8x8xf32>
    %46 = vector.shape_cast %43 : vector<8x8xf32> to vector<1x1x8x8xf32>
    tpu.vector_store %arg9[%c0_40, %c2, %c0_41, %c0_42], %46 {strides = array<i32>} : memref<1x4x8x8xf32, #tpu.memory_space<vmem>>, vector<1x1x8x8xf32>,
    %47 = vector.extract_strided_slice %13 {offsets = [0, 16], sizes = [8, 8], strides = [1, 1]} : vector<8x32xf32> to vector<8x8xf32>
    %c0_43 = arith.constant 0 : index
    %c2_44 = arith.constant 2 : index
    %c0_45 = arith.constant 0 : index
    %c0_46 = arith.constant 0 : index
    %48 = vector.load %arg10[%c0_43, %c2_44, %c0_45, %c0_46] : memref<1x4x8x8xf32, #tpu.memory_space<vmem>>, vector<1x1x8x8xf32>
    %49 = vector.shape_cast %48 : vector<1x1x8x8xf32> to vector<8x8xf32>
    %50 = vector.shape_cast %47 : vector<8x8xf32> to vector<1x1x8x8xf32>
    tpu.vector_store %arg10[%c0_43, %c2_44, %c0_45, %c0_46], %50 {strides = array<i32>} : memref<1x4x8x8xf32, #tpu.memory_space<vmem>>, vector<1x1x8x8xf32>,
    %51 = vector.extract_strided_slice %18 {offsets = [0, 16], sizes = [8, 8], strides = [1, 1]} : vector<8x32xf32> to vector<8x8xf32>
    %c0_47 = arith.constant 0 : index
    %c2_48 = arith.constant 2 : index
    %c0_49 = arith.constant 0 : index
    %c0_50 = arith.constant 0 : index
    %52 = vector.load %arg11[%c0_47, %c2_48, %c0_49, %c0_50] : memref<1x4x8x8xf32, #tpu.memory_space<vmem>>, vector<1x1x8x8xf32>
    %53 = vector.shape_cast %52 : vector<1x1x8x8xf32> to vector<8x8xf32>
    %54 = vector.shape_cast %51 : vector<8x8xf32> to vector<1x1x8x8xf32>
    tpu.vector_store %arg11[%c0_47, %c2_48, %c0_49, %c0_50], %54 {strides = array<i32>} : memref<1x4x8x8xf32, #tpu.memory_space<vmem>>, vector<1x1x8x8xf32>,
    %55 = vector.extract_strided_slice %8 {offsets = [0, 24], sizes = [8, 8], strides = [1, 1]} : vector<8x32xf32> to vector<8x8xf32>
    %c0_51 = arith.constant 0 : index
    %c3 = arith.constant 3 : index
    %c0_52 = arith.constant 0 : index
    %c0_53 = arith.constant 0 : index
    %56 = vector.load %arg9[%c0_51, %c3, %c0_52, %c0_53] : memref<1x4x8x8xf32, #tpu.memory_space<vmem>>, vector<1x1x8x8xf32>
    %57 = vector.shape_cast %56 : vector<1x1x8x8xf32> to vector<8x8xf32>
    %58 = vector.shape_cast %55 : vector<8x8xf32> to vector<1x1x8x8xf32>
    tpu.vector_store %arg9[%c0_51, %c3, %c0_52, %c0_53], %58 {strides = array<i32>} : memref<1x4x8x8xf32, #tpu.memory_space<vmem>>, vector<1x1x8x8xf32>,
    %59 = vector.extract_strided_slice %13 {offsets = [0, 24], sizes = [8, 8], strides = [1, 1]} : vector<8x32xf32> to vector<8x8xf32>
    %c0_54 = arith.constant 0 : index
    %c3_55 = arith.constant 3 : index
    %c0_56 = arith.constant 0 : index
    %c0_57 = arith.constant 0 : index
    %60 = vector.load %arg10[%c0_54, %c3_55, %c0_56, %c0_57] : memref<1x4x8x8xf32, #tpu.memory_space<vmem>>, vector<1x1x8x8xf32>
    %61 = vector.shape_cast %60 : vector<1x1x8x8xf32> to vector<8x8xf32>
    %62 = vector.shape_cast %59 : vector<8x8xf32> to vector<1x1x8x8xf32>
    tpu.vector_store %arg10[%c0_54, %c3_55, %c0_56, %c0_57], %62 {strides = array<i32>} : memref<1x4x8x8xf32, #tpu.memory_space<vmem>>, vector<1x1x8x8xf32>,
    %63 = vector.extract_strided_slice %18 {offsets = [0, 24], sizes = [8, 8], strides = [1, 1]} : vector<8x32xf32> to vector<8x8xf32>
    %c0_58 = arith.constant 0 : index
    %c3_59 = arith.constant 3 : index
    %c0_60 = arith.constant 0 : index
    %c0_61 = arith.constant 0 : index
    %64 = vector.load %arg11[%c0_58, %c3_59, %c0_60, %c0_61] : memref<1x4x8x8xf32, #tpu.memory_space<vmem>>, vector<1x1x8x8xf32>
    %65 = vector.shape_cast %64 : vector<1x1x8x8xf32> to vector<8x8xf32>
    %66 = vector.shape_cast %63 : vector<8x8xf32> to vector<1x1x8x8xf32>
    tpu.vector_store %arg11[%c0_58, %c3_59, %c0_60, %c0_61], %66 {strides = array<i32>} : memref<1x4x8x8xf32, #tpu.memory_space<vmem>>, vector<1x1x8x8xf32>,
    return
  }
  func.func @transform_0(%arg0: i32, %arg1: i32) -> (i32, i32, i32) {
    %c0_i32 = arith.constant 0 : i32
    %c0_i32_0 = arith.constant 0 : i32
    return %arg0, %arg1, %c0_i32 : i32, i32, i32
  }
  func.func @transform_1(%arg0: i32, %arg1: i32) -> (i32, i32) {
    %c0_i32 = arith.constant 0 : i32
    %c0_i32_0 = arith.constant 0 : i32
    %c0_i32_1 = arith.constant 0 : i32
    return %c0_i32, %c0_i32_0 : i32, i32
  }
  func.func @transform_2(%arg0: i32, %arg1: i32) -> (i32, i32) {
    %c0_i32 = arith.constant 0 : i32
    %c0_i32_0 = arith.constant 0 : i32
    %c0_i32_1 = arith.constant 0 : i32
    return %c0_i32, %c0_i32_0 : i32, i32
  }
  func.func @transform_3(%arg0: i32, %arg1: i32) -> (i32, i32) {
    %c0_i32 = arith.constant 0 : i32
    %c0_i32_0 = arith.constant 0 : i32
    %c0_i32_1 = arith.constant 0 : i32
    return %c0_i32, %c0_i32_0 : i32, i32
  }
  func.func @transform_4(%arg0: i32, %arg1: i32) -> (i32, i32) {
    %c0_i32 = arith.constant 0 : i32
    %c0_i32_0 = arith.constant 0 : i32
    %c0_i32_1 = arith.constant 0 : i32
    return %c0_i32, %c0_i32_0 : i32, i32
  }
  func.func @transform_5(%arg0: i32, %arg1: i32) -> (i32, i32) {
    %c0_i32 = arith.constant 0 : i32
    %c0_i32_0 = arith.constant 0 : i32
    %c0_i32_1 = arith.constant 0 : i32
    return %c0_i32, %c0_i32_0 : i32, i32
  }
  func.func @transform_6(%arg0: i32, %arg1: i32) -> (i32, i32) {
    %c0_i32 = arith.constant 0 : i32
    %c0_i32_0 = arith.constant 0 : i32
    %c0_i32_1 = arith.constant 0 : i32
    return %c0_i32, %c0_i32_0 : i32, i32
  }
  func.func @transform_7(%arg0: i32, %arg1: i32) -> (i32, i32, i32, i32) {
    %c0_i32 = arith.constant 0 : i32
    %c0_i32_0 = arith.constant 0 : i32
    %c0_i32_1 = arith.constant 0 : i32
    return %arg0, %c0_i32, %arg1, %c0_i32_0 : i32, i32, i32, i32
  }
  func.func @transform_8(%arg0: i32, %arg1: i32) -> (i32, i32, i32, i32) {
    %c0_i32 = arith.constant 0 : i32
    %c0_i32_0 = arith.constant 0 : i32
    %c0_i32_1 = arith.constant 0 : i32
    return %arg0, %c0_i32, %arg1, %c0_i32_0 : i32, i32, i32, i32
  }
  func.func @transform_9(%arg0: i32, %arg1: i32) -> (i32, i32, i32, i32) {
    %c0_i32 = arith.constant 0 : i32
    %c0_i32_0 = arith.constant 0 : i32
    %c0_i32_1 = arith.constant 0 : i32
    return %arg0, %c0_i32, %arg1, %c0_i32_0 : i32, i32, i32, i32
  }
}

</mosaic_0001>

<bundles_post_ra>
// kernel: tpu_custom_call.1
= control target key start
LH: loop header
LB: loop body
LE: loop exit
PB: predicated region body
PF: predicated region fallthrough
CT: control target
= control target key end

     0   :  { %s1583_s0 = inlined_call_operand.hbm [shape: f32[2,8,32], index: 0, kind: input, shape index: {}]   ;;  %s1584_s1 = inlined_call_operand.hbm [shape: f32[32,32], index: 1, kind: input, shape index: {}]   ;;  %s1585_s2 = inlined_call_operand.vmem [shape: f32[1,32], index: 2, kind: input, shape index: {}]   ;;  %s1586_s3 = inlined_call_operand.hbm [shape: f32[32,32], index: 3, kind: input, shape index: {}]   ;;  %s1587_s4 = inlined_call_operand.vmem [shape: f32[1,32], index: 4, kind: input, shape index: {}]   ;;  %s1588_s5 = inlined_call_operand.hbm [shape: f32[32,32], index: 5, kind: input, shape index: {}]   ;;  %s1589_s6 = inlined_call_operand.vmem [shape: f32[1,32], index: 6, kind: input, shape index: {}]   ;;  %s1590_s7 = inlined_call_operand.hbm [shape: f32[2,4,8,8], index: 7, kind: output, shape index: {0}]   ;;  %s1591_s8 = inlined_call_operand.hbm [shape: f32[2,4,8,8], index: 8, kind: output, shape index: {1}]   ;;  %s1592_s9 = inlined_call_operand.hbm [shape: f32[2,4,8,8], index: 9, kind: output, shape index: {2}]  }
   0x1   :  { %1595 = sst [smem:[#allocation20_spill]] %s1583_s0 }
   0x2   :  { %1596 = sst [smem:[#allocation21_spill]] %s1584_s1 }
   0x3   :  { %1597 = sst [smem:[#allocation22_spill]] %s1585_s2 }
   0x4   :  { %1598 = sst [smem:[#allocation23_spill]] %s1586_s3 }
   0x5   :  { %1599 = sst [smem:[#allocation24_spill]] %s1587_s4 }
   0x6   :  { %1600 = sst [smem:[#allocation25_spill]] %s1588_s5 }
   0x7   :  { %1601 = sst [smem:[#allocation26_spill]] %s1589_s6 }
   0x8   :  { %15 = vsyncpa [#allocation3], 0 }
   0x9   :  { %17 = vsyncpa [#allocation3 + $0x1], 0 }
   0xa   :  { %18 = vsyncpa [#allocation6], 0 }
   0xb   :  { %19 = vsyncpa [#allocation9], 0 }
   0xc   :  { %20 = vsyncpa [#allocation4], 0 }
   0xd   :  { %22 = vsyncpa [#allocation4 + $0x1], 0 }
   0xe   :  { %23 = vsyncpa [#allocation12], 0 }
   0xf   :  { %25 = vsyncpa [#allocation12 + $0x1], 0  ;;  %s1312_s30 = smov 0   ;;  %s1314_s10 = smov 0  }
  0x10   :  { %s1316_s11 = smov 0   ;;  %s1318_s12 = smov 0  }
  0x11   :  { %s1320_s13 = smov 0   ;;  %s1322_s14 = smov 0  }
  0x12 LB: > { %s1343_s15 = sadd.s32 4294967295, %s1250_s14   ;;  %p826_p0 = scmp.ge.s32.totalorder %s1250_s14, 1  ;;  %s1250_s14 = sphi %s1322_s14, %s31_s14   ;;  %s1246_s13 = sphi %s1320_s13, %s1622_s13   ;;  %s1242_s12 = sphi %s1318_s12, %s1621_s12   ;;  %s1238_s11 = sphi %s1316_s11, %s1620_s11   ;;  %s1234_s10 = sphi %s1314_s10, %s1619_s10   ;;  %s1230_s30 = sphi %s1312_s30, %s1618_s30  }
  0x13   : > { %p66_p1 = scmp.eq.s32.totalorder %s1343_s15, 0  ;;  %p286_p2 = scmp.lt.s32.totalorder %s1250_s14, 3 }
  0x14   : > { %s1602_s1 = sld [smem:[#allocation21_spill]]  ;;  %s1252_s20 = smov [#allocation5]  }
  0x15   : > { %p1351_p3 = pnand %p826_p0, %p286_p2  ;;  %s299_s21 = sshll.u32 %s1252_s20, 4  ;;  %s300_s21 = int_to_ptr.vmem [resolvable:$true] %s299_s21 }
  0x16   : > { %p830_p6 = scmp.ge.s32.totalorder %s1250_s14, 2  ;;  %s1605_s3 = sld [smem:[#allocation23_spill]] }
  0x17   : > { %p887_p4 = pneg %p1351_p3  ;;  %s1253_s26 = smov 128  }
  0x18   : > { %s1254_s27 = smov 8   ;;  %s1255_s28 = smov [#allocation7]  }
  0x19   : > { %p1359_p5 = pnand %p887_p4, %p66_p1  ;;  %s316_s29 = sshll.u32 %s1255_s28, 4  ;;  %s317_s29 = int_to_ptr.vmem [resolvable:$true] %s316_s29 }
  0x1a   : > { %s297_s18 = sshll.u32 %s1602_s1, 4  ;;  %s1606_s5 = sld [smem:[#allocation25_spill]]  ;;  %s298_s18 = int_to_ptr.hbm [resolvable:$true] %s297_s18 }
  0x1b   : > { %890 = dma.hbm_to_vmem [thread:$0]  (!%p1359_p5), %s298_s18, 512, %s300_s21, [#allocation6], %s1253_s26, %s1253_s26, %s1254_s27  }
  0x1c   : > { %s314_s25 = sshll.u32 %s1605_s3, 4  ;;  %s1256_s23 = smov [#allocation8]   ;;  %s315_s25 = int_to_ptr.hbm [resolvable:$true] %s314_s25 }
  0x1d   : > { %893 = dma.hbm_to_vmem [thread:$0]  (!%p1359_p5), %s315_s25, 512, %s317_s29, [#allocation6], %s1253_s26, %s1253_s26, %s1254_s27  }
  0x1e   : > { %s333_s24 = sshll.u32 %s1256_s23, 4  ;;  %s1593_s18 = sadd.s32 4294967294, %s1250_s14   ;;  %s334_s24 = int_to_ptr.vmem [resolvable:$true] %s333_s24 }
  0x1f   : > { %s43_s21 = sadd.s32 1, %s1246_s13  ;;  %s52_s28 = sadd.s32 1, %s1238_s11 }
  0x20   : > { %s331_s20 = sshll.u32 %s1606_s5, 4  ;;  %p45_p7 = scmp.ge.s32.totalorder %s43_s21, 2  ;;  %s332_s20 = int_to_ptr.hbm [resolvable:$true] %s331_s20 }
  0x21   : > { %896 = dma.hbm_to_vmem [thread:$0]  (!%p1359_p5), %s332_s20, 512, %s334_s24, [#allocation9], %s1253_s26, %s1253_s26, %s1254_s27  }
  0x22   : > { %p59_p8 = scmp.ne.s32.totalorder %s1238_s11, %s1234_s10  ;;  %p60_p9 = scmp.eq.s32.totalorder %s1250_s14, 0 }
  0x23   : > { %p65_p10 = scmp.ne.s32.totalorder %s1234_s10, %s1230_s30  ;;  %s1624_s21 = smov (%p45_p7, %s43_s21), 0 }
  0x24   : > { %1607 = sst [smem:[#allocation19_spill]] %s1624_s21  ;;  %p1386_p11 = por %p60_p9, %p59_p8 }
  0x25   : > { %p1392_p12 = por %p66_p1, %p65_p10  ;;  %s47_s26 = ssub.s32 %s1246_s13, %s1624_s21 }
  0x26   : > { %p217_p13 = scmp.eq.s32.totalorder %s1343_s15, 1  ;;  %p50_p0 = scmp.eq.s32.totalorder %s47_s26, 0 }
  0x27   : > { %p223_p2 = scmp.eq.s32.totalorder %s1593_s18, 1  ;;  %p914_p5 = scmp.lt.s32.totalorder %s1250_s14, 2 }
  0x28   : > { %p1401_p4 = por %p217_p13, %p59_p8  ;;  %s350_s17 = sand.u32 1, %s1238_s11  }
  0x29   : > { %s1407_s29 = scalar_select %p50_p0, %s1238_s11, %s52_s28  }
  0x2a   : > { %p1409_p7 = por %p223_p2, %p65_p10  ;;  %s831_s20 = sshll.u32 %s350_s17, 3 }
  0x2b   : > { %s832_s23 = sshll.u32 %s1246_s13, 3  ;;  %s1612_s0 = sld [smem:[#allocation20_spill]] }
  0x2c   : > { %s354_s3 = scalar_lea.vmem [#allocation2], %s831_s20  ;;  %p898_p8 = pnand %p914_p5, %p1386_p11 }
  0x2d   : > { %s363_s18 = sshll.u32 %s354_s3, 4  ;;  %s351_s28 = scalar_lea.sflag [#allocation3], %s350_s17  ;;  %s364_s18 = int_to_ptr.vmem [resolvable:$true] %s363_s18 }
  0x2e   : > { %s1423_s21 = sand.u32 (!%p1351_p3), 1, %s1234_s10  }
  0x2f   : > { %372 = sbr.rel (%p1351_p3) target bundleno = 348 (0x15c), region = 48  ;;  %s834_s1 = sshll.u32 (!%p1351_p3), %s1423_s21, 3 }
  0x30   : > { %s378_s20 = scalar_lea.vmem (!%p1351_p3), [#allocation2], %s834_s1 }
  0x31   : > { %s359_s26 = scalar_lea.hbm %s1612_s0, %s832_s23  ;;  %s375_s23 = scalar_lea.sflag (!%p1351_p3), [#allocation3], %s1423_s21 }
  0x32   : > { %s361_s5 = sshll.u32 %s359_s26, 4  ;;  %s362_s5 = int_to_ptr.hbm [resolvable:$true] %s361_s5 }
  0x33   : > { %900 = dma.hbm_to_vmem [thread:$0]  (!%p898_p8), %s362_s5, 128, %s364_s18, %s351_s28  }
  0x34   : > { %1209 = dma.done.wait (%p1392_p12), %s375_s23, 128  }
  0x35   : > { %1211 = vsyncadd (%p1392_p12), %s375_s23, 4294967168 }
  0x36   : > { %1213 = dma.done.wait (%p66_p1), [#allocation6], 1024  }
  0x37   : > { %1215 = vsyncadd (%p66_p1), [#allocation6], 4294966272 }
  0x38   : > { %1217 = dma.done.wait (%p66_p1), [#allocation9], 512  }
  0x39   : > { %1219 = vsyncadd (%p66_p1), [#allocation9], 4294966784  ;;  %v443_v0 = vld [vmem:[#allocation5 + $0x18] sm:$0xff]  ;;  %v442_v2 = vld [vmem:[#allocation5 + $0x10] sm:$0xff]  ;;  %vm448_vm0 = vcmask 261120   ;;  %s838_s3 = sshll.u32 %s1423_s21, 5 }
  0x3a   : > { %v476_v1 = vld [vmem:[#allocation7 + $0x18] sm:$0xff]  ;;  %464 = vmatpush.msra.mxu0 %v443_v0  ;;  %v475_v3 = vld [vmem:[#allocation7 + $0x10] sm:$0xff]  ;;  %v441_v4 = vld [vmem:[#allocation5 + $0x8] sm:$0xff]  ;;  %s1613_s2 = sld [smem:[#allocation22_spill]]  ;;  %vm529_vm1 = vcmask 64512   ;;  %s1446_s22 = scalar_lea.vmem [#allocation11], %s838_s3 }
  0x3b   : > { %493 = vmatpush.msra.mxu1 %v476_v1  ;;  %v474_v5 = vld [vmem:[#allocation7 + $0x8] sm:$0xff]  ;;  %v504_v6 = vld [vmem:[#allocation8 + $0x18] sm:$0xff]  ;;  %v503_v7 = vld [vmem:[#allocation8 + $0x10] sm:$0xff]  ;;  %s1614_s4 = sld [smem:[#allocation24_spill]]  ;;  %s1257_s17 = smov 104  }
  0x3c   : > { %465 = vmatpush.msra.mxu0 %v442_v2  ;;  %521 = vmatpush.msra.mxu2 %v504_v6  ;;  %v440_v8 = vld [vmem:[#allocation5] sm:$0xff]  ;;  %v439_v10 = vld [vmem:[%s378_s20] sm:$0xff]  ;;  %v502_v11 = vld [vmem:[#allocation8 + $0x8] sm:$0xff]  ;;  %s1258_s24 = smov 120   ;;  %s1450_s26 = scalar_lea.vmem [#allocation10], %s838_s3 }
  0x3d   : > { %494 = vmatpush.msra.mxu1 %v475_v3  ;;  %v473_v9 = vld [vmem:[#allocation7] sm:$0xff]  ;;  %s1259_s28 = smov 112   ;;  %s1615_s6 = sld [smem:[#allocation26_spill]] }
  0x3e   : > { %466 = vmatpush.msra.mxu0 %v441_v4  ;;  %522 = vmatpush.msra.mxu2 %v503_v7  ;;  %v501_v12 = vld [vmem:[#allocation8] sm:$0xff]  ;;  %s1457_s20 = scalar_lea.vmem [#allocation13], %s838_s3  ;;  %s1468_s3 = sshll.u32 %s1242_s12, 5 }
  0x3f   : > { %495 = vmatpush.msra.mxu1 %v474_v5  ;;  %s622_s18 = scalar_lea.hbm %s1591_s8, %s1468_s3  ;;  %s623_s25 = sshll.u32 %s1446_s22, 4  ;;  %s624_s25 = int_to_ptr.vmem [resolvable:$true] %s623_s25 }
  0x40   : > { %467 = vmatpush.msra.mxu0 %v440_v8  ;;  %523 = vmatpush.msra.mxu2 %v502_v11  ;;  %v977_v13 = vld [vmem:[%s1613_s2] ss:$0 sm:$0xff]  ;;  %s640_s1 = scalar_lea.hbm %s1592_s9, %s1468_s3  ;;  %s604_s19 = scalar_lea.hbm %s1590_s7, %s1468_s3 }
  0x41   : > { %496 = vmatpush.msra.mxu1 %v473_v9  ;;  %841 = vmatmul.msk.f32.vlgmr.msra.gmra.mxu0 %vm448_vm0, %v439_v10  ;;  %v978_v14 = vld [vmem:[%s1614_s4] ss:$0 sm:$0xff]  ;;  %s1120_s4 = scalar_lea.hbm %s1591_s8, 64 }
  0x42   : > { %842 = vmatmul.msk.f32.vlgmr.msra.gmra.mxu1 %vm448_vm0, %v439_v10  ;;  %524 = vmatpush.msra.mxu2 %v501_v12 }
  0x43   : > { %843 = vmatmul.msk.f32.vlgmr.msra.gmra.mxu2 %vm448_vm0, %v439_v10  ;;  %v979_v20 = vld [vmem:[%s1615_s6] ss:$0 sm:$0xff] }
  0xbe   : > { %v469_v15 = vpop.f32.mrf.mxu0 }
  0xbf   : > { %v498_v16 = vpop.f32.mrf.mxu1  ;;  %v470_v17 = vadd.f32 %v977_v13, %v469_v15 }
  0xc0   : > { %v499_v18 = vadd.f32 %v978_v14, %v498_v16 }
  0xc1   : > { %v472_v19 = vmul.f32 0.35355338, %v470_v17 }
  0xc2   : > { %531 = vst.msk [vmem:[%s1446_s22] sm:$0xff] %vm529_vm1, %v499_v18  ;;  %571 = vrot.lane.b32.xlu1 %v499_v18, %s1257_s17  ;;  %540 = vrot.lane.b32.xlu0 %v499_v18, %s1258_s24 }
  0xc3   : > { %530 = vst.msk [vmem:[%s1450_s26] sm:$0xff] %vm529_vm1, %v472_v19  ;;  %551 = vrot.lane.b32.xlu2 %v472_v19, %s1259_s28 }
  0xc6   : > { %v526_v21 = vpop.f32.mrf.mxu2 }
  0xc7   : > { %v527_v22 = vadd.f32 %v979_v20, %v526_v21 }
  0xc9   : > { %532 = vst.msk [vmem:[%s1457_s20] sm:$0xff] %vm529_vm1, %v527_v22 }
  0xca   : > { %556 = vrot.lane.b32.xlu0 %v499_v18, %s1259_s28  ;;  %534 = vrot.lane.b32.xlu1 %v472_v19, %s1258_s24 }
  0xcb   : > { %546 = vrot.lane.b32.xlu2 %v527_v22, %s1258_s24  ;;  %s1480_s24 = sshll.u32 %s622_s18, 4  ;;  %s626_s24 = int_to_ptr.hbm [resolvable:$true] %s1480_s24 }
  0xcc   : > { %s1114_s18 = sshra.s32 %s626_s24, 4  ;;  %s1115_s18 = int_to_ptr.hbm [resolvable:$true] %s1114_s18 }
  0xcd   : > { %s1116_s0 = scalar_lea.hbm %s1115_s18, 32  ;;  %p1121_p10 = scmp.lt.s32.totalorder %s1115_s18, %s1591_s8 }
  0xce   : > { %p1117_p1 = scmp.ne.s32.totalorder %s1115_s18, %s1116_s0  ;;  %p1122_p11 = scmp.lt.s32.totalorder %s1120_s4, %s1116_s0 }
  0xd0   : > { %p1118_p3 = pnand %p1117_p1, %p1401_p4  ;;  %p1123_p12 = por %p1122_p11, %p1121_p10 }
  0xd2   : > { %561 = vrot.lane.b32.xlu0 %v527_v22, %s1259_s28  ;;  %566 = vrot.lane.b32.xlu1 %v472_v19, %s1257_s17  ;;  %p1119_p9 = pneg %p1118_p3 }
  0xd3   : > { %576 = vrot.lane.b32.xlu2 %v527_v22, %s1257_s17  ;;  %s586_s17 = sand.u32 1, %s1343_s15  }
  0xd4   : > { %s1495_s15 = scalar_lea.sflag [#allocation12], %s586_s17  ;;  %p1124_p13 = pnand %p1123_p12, %p1119_p9 }
 0x11d   : > { %v552_v23 = vpop.permute.xlu2 %551 }
 0x11e   : > { %847 = vst.msk [vmem:[%s1450_s26 + $0x10] sm:$0xff] %vm529_vm1, %v552_v23 }
 0x125   : > { %v547_v24 = vpop.permute.xlu2 %546 }
 0x126   : > { %846 = vst.msk [vmem:[%s1457_s20 + $0x8] sm:$0xff] %vm529_vm1, %v547_v24 }
 0x12d   : > { %v577_v25 = vpop.permute.xlu2 %576 }
 0x12e   : > { %852 = vst.msk [vmem:[%s1457_s20 + $0x18] sm:$0xff] %vm529_vm1, %v577_v25 }
 0x134   : > { %v572_v26 = vpop.permute.xlu1 %571  ;;  %v541_v27 = vpop.permute.xlu0 %540 }
 0x135   : > { %851 = vst.msk [vmem:[%s1446_s22 + $0x18] sm:$0xff] %vm529_vm1, %v572_v26 }
 0x136   : > { %845 = vst.msk [vmem:[%s1446_s22 + $0x8] sm:$0xff] %vm529_vm1, %v541_v27 }
 0x13c   : > { %v557_v28 = vpop.permute.xlu0 %556  ;;  %v535_v29 = vpop.permute.xlu1 %534 }
 0x13d   : > { %848 = vst.msk [vmem:[%s1446_s22 + $0x10] sm:$0xff] %vm529_vm1, %v557_v28 }
 0x13e   : > { %844 = vst.msk [vmem:[%s1450_s26 + $0x8] sm:$0xff] %vm529_vm1, %v535_v29 }
 0x13f   : > { %1127 = shalt.err (!%p1124_p13)
}
 0x140   : > { %s1260_s3 = smov 128   ;;  %s1261_s17 = smov 8  }
 0x141   : > { %882 = dma.vmem_to_hbm [thread:$0]  (%p1401_p4), %s624_s25, 512, %s626_s24, %s1495_s15, %s1260_s3, %s1260_s3, %s1261_s17  }
 0x142   : > { %s605_s2 = sshll.u32 %s1450_s26, 4  ;;  %s1512_s6 = sshll.u32 %s604_s19, 4  ;;  %s606_s2 = int_to_ptr.vmem [resolvable:$true] %s605_s2  ;;  %s608_s6 = int_to_ptr.hbm [resolvable:$true] %s1512_s6 }
 0x143   : > { %s641_s0 = sshll.u32 %s1457_s20, 4  ;;  %s1515_s4 = sshll.u32 %s640_s1, 4  ;;  %s1518_s0 = int_to_ptr.vmem [resolvable:$true] %s641_s0  ;;  %s644_s4 = int_to_ptr.hbm [resolvable:$true] %s1515_s4 }
 0x144   : > { %v562_v30 = vpop.permute.xlu0 %561  ;;  %v567_v31 = vpop.permute.xlu1 %566  ;;  %s582_s25 = scalar_lea.sflag [#allocation4], %s1423_s21  ;;  %s1142_s24 = sshra.s32 %s608_s6, 4  ;;  %s1143_s24 = int_to_ptr.hbm [resolvable:$true] %s1142_s24 }
 0x145   : > { %849 = vst.msk [vmem:[%s1457_s20 + $0x10] sm:$0xff] %vm529_vm1, %v562_v30  ;;  %s1144_s28 = scalar_lea.hbm %s1143_s24, 32  ;;  %s1148_s5 = scalar_lea.hbm %s1590_s7, 64 }
 0x146   : > { %850 = vst.msk [vmem:[%s1450_s26 + $0x18] sm:$0xff] %vm529_vm1, %v567_v31  ;;  %p1145_p0 = scmp.ne.s32.totalorder %s1143_s24, %s1144_s28  ;;  %p1149_p8 = scmp.lt.s32.totalorder %s1143_s24, %s1590_s7 }
 0x147   : > { %p1150_p1 = scmp.lt.s32.totalorder %s1148_s5, %s1144_s28 }
 0x148   : > { %p1146_p2 = pnand %p1145_p0, %p1401_p4 }
 0x149   : > { %p1151_p3 = por %p1150_p1, %p1149_p8 }
 0x14a   : > { %p1147_p5 = pneg %p1146_p2 }
 0x14c   : > { %p1152_p9 = pnand %p1151_p3, %p1147_p5 }
 0x14e   : > { %1155 = shalt.err (!%p1152_p9)
}
 0x14f   : > { %881 = dma.vmem_to_hbm [thread:$0]  (%p1401_p4), %s606_s2, 512, %s608_s6, %s582_s25, %s1260_s3, %s1260_s3, %s1261_s17  }
 0x150   : > { %s1170_s21 = sshra.s32 %s644_s4, 4  ;;  %s1176_s12 = scalar_lea.hbm %s1592_s9, 64  ;;  %s1171_s21 = int_to_ptr.hbm [resolvable:$true] %s1170_s21 }
 0x151   : > { %s1172_s26 = scalar_lea.hbm %s1171_s21, 32  ;;  %p1177_p13 = scmp.lt.s32.totalorder %s1171_s21, %s1592_s9 }
 0x152   : > { %p1173_p10 = scmp.ne.s32.totalorder %s1171_s21, %s1172_s26  ;;  %p1178_p0 = scmp.lt.s32.totalorder %s1176_s12, %s1172_s26 }
 0x154   : > { %p1174_p11 = pnand %p1173_p10, %p1401_p4  ;;  %p1179_p2 = por %p1178_p0, %p1177_p13 }
 0x156   : > { %p1175_p12 = pneg %p1174_p11 }
 0x158   : > { %p1180_p5 = pnand %p1179_p2, %p1175_p12 }
 0x15a   : > { %1183 = shalt.err (!%p1180_p5)
}
 0x15b   : > { %883 = dma.vmem_to_hbm [thread:$0]  (%p1401_p4), %s1518_s0, 512, %s644_s4, %s1495_s15, %s1260_s3, %s1260_s3, %s1261_s17  }
 0x15c PF: > { %s658_s2 = sand.u32 1, %s1230_s30   ;;  %p902_p8 = pnand %p830_p6, %p1409_p7 }
 0x15d   : > { %s659_s6 = scalar_lea.sflag [#allocation4], %s658_s2 }
 0x15e   : > { %p903_p1 = pneg %p902_p8 }
 0x160   : > { %1221 = dma.done.wait (%p903_p1), %s659_s6, 512  }
 0x161   : > { %1223 = vsyncadd (%p903_p1), %s659_s6, 4294966784  ;;  %s1616_s27 = sadd.s32 4294967294, %s1250_s14  }
 0x162   : > { %s668_s25 = sand.u32 1, %s1616_s27  }
 0x163   : > { %s669_s1 = scalar_lea.sflag [#allocation12], %s668_s25 }
 0x164   : > { %1225 = dma.done.wait (%p903_p1), %s669_s1, 1024  }
 0x165   : > { %1227 = vsyncadd (%p903_p1), %s669_s1, 4294966272  ;;  %s31_s14 = sadd.s32 1, %s1250_s14   ;;  %s1617_s16 = sld [smem:[#allocation19_spill]] }
 0x166   : > { %p28_p4 = scmp.ge.s32.totalorder %s31_s14, 4   ;;  %s1618_s30 = smov %s1234_s10 }
 0x167   : > { %s1619_s10 = smov %s1238_s11  ;;  %s1620_s11 = smov %s1407_s29 }
 0x168   : > { %s1621_s12 = smov %s1246_s13  ;;  %30 = sbr.rel (!%p28_p4) target bundleno = 18 (0x12), region = 146 }
 0x16b   : > { %s1622_s13 = smov %s1617_s16 }
 0x16d   :  { %685 = vsyncpa [#allocation3], 1 }
 0x16e   :  { %687 = vsyncpa [#allocation3 + $0x1], 1 }
 0x16f   :  { %688 = vsyncpa [#allocation6], 1 }
 0x170   :  { %689 = vsyncpa [#allocation9], 1 }
 0x171   :  { %690 = vsyncpa [#allocation4], 1 }
 0x172   :  { %692 = vsyncpa [#allocation4 + $0x1], 1 }
 0x173   :  { %693 = vsyncpa [#allocation12], 1 }
 0x174   :  { %695 = vsyncpa [#allocation12 + $0x1], 1 }

// kernel: tpu_custom_call.1
= control target key start
LH: loop header
LB: loop body
LE: loop exit
PB: predicated region body
PF: predicated region fallthrough
CT: control target
= control target key end

     0   :  { %s1583_s0 = inlined_call_operand.hbm [shape: f32[2,8,32], index: 0, kind: input, shape index: {}]   ;;  %s1584_s1 = inlined_call_operand.hbm [shape: f32[32,32], index: 1, kind: input, shape index: {}]   ;;  %s1585_s2 = inlined_call_operand.vmem [shape: f32[1,32], index: 2, kind: input, shape index: {}]   ;;  %s1586_s3 = inlined_call_operand.hbm [shape: f32[32,32], index: 3, kind: input, shape index: {}]   ;;  %s1587_s4 = inlined_call_operand.vmem [shape: f32[1,32], index: 4, kind: input, shape index: {}]   ;;  %s1588_s5 = inlined_call_operand.hbm [shape: f32[32,32], index: 5, kind: input, shape index: {}]   ;;  %s1589_s6 = inlined_call_operand.vmem [shape: f32[1,32], index: 6, kind: input, shape index: {}]   ;;  %s1590_s7 = inlined_call_operand.hbm [shape: f32[2,4,8,8], index: 7, kind: output, shape index: {0}]   ;;  %s1591_s8 = inlined_call_operand.hbm [shape: f32[2,4,8,8], index: 8, kind: output, shape index: {1}]   ;;  %s1592_s9 = inlined_call_operand.hbm [shape: f32[2,4,8,8], index: 9, kind: output, shape index: {2}]  }
   0x1   :  { %1595 = sst [smem:[#allocation20_spill]] %s1583_s0 }
   0x2   :  { %1596 = sst [smem:[#allocation21_spill]] %s1584_s1 }
   0x3   :  { %1597 = sst [smem:[#allocation22_spill]] %s1585_s2 }
   0x4   :  { %1598 = sst [smem:[#allocation23_spill]] %s1586_s3 }
   0x5   :  { %1599 = sst [smem:[#allocation24_spill]] %s1587_s4 }
   0x6   :  { %1600 = sst [smem:[#allocation25_spill]] %s1588_s5 }
   0x7   :  { %1601 = sst [smem:[#allocation26_spill]] %s1589_s6 }
   0x8   :  { %15 = vsyncpa [#allocation3], 0 }
   0x9   :  { %17 = vsyncpa [#allocation3 + $0x1], 0 }
   0xa   :  { %18 = vsyncpa [#allocation6], 0 }
   0xb   :  { %19 = vsyncpa [#allocation9], 0 }
   0xc   :  { %20 = vsyncpa [#allocation4], 0 }
   0xd   :  { %22 = vsyncpa [#allocation4 + $0x1], 0 }
   0xe   :  { %23 = vsyncpa [#allocation12], 0 }
   0xf   :  { %25 = vsyncpa [#allocation12 + $0x1], 0  ;;  %s1312_s30 = smov 0   ;;  %s1314_s10 = smov 0  }
  0x10   :  { %s1316_s11 = smov 0   ;;  %s1318_s12 = smov 0  }
  0x11   :  { %s1320_s13 = smov 0   ;;  %s1322_s14 = smov 0  }
  0x12 LB: > { %s1343_s15 = sadd.s32 4294967295, %s1250_s14   ;;  %p826_p0 = scmp.ge.s32.totalorder %s1250_s14, 1  ;;  %s1250_s14 = sphi %s1322_s14, %s31_s14   ;;  %s1246_s13 = sphi %s1320_s13, %s1622_s13   ;;  %s1242_s12 = sphi %s1318_s12, %s1621_s12   ;;  %s1238_s11 = sphi %s1316_s11, %s1620_s11   ;;  %s1234_s10 = sphi %s1314_s10, %s1619_s10   ;;  %s1230_s30 = sphi %s1312_s30, %s1618_s30  }
  0x13   : > { %p66_p1 = scmp.eq.s32.totalorder %s1343_s15, 0  ;;  %p286_p2 = scmp.lt.s32.totalorder %s1250_s14, 3 }
  0x14   : > { %s1602_s1 = sld [smem:[#allocation21_spill]]  ;;  %s1252_s20 = smov [#allocation5]  }
  0x15   : > { %p1351_p3 = pnand %p826_p0, %p286_p2  ;;  %s299_s21 = sshll.u32 %s1252_s20, 4  ;;  %s300_s21 = int_to_ptr.vmem [resolvable:$true] %s299_s21 }
  0x16   : > { %p830_p6 = scmp.ge.s32.totalorder %s1250_s14, 2  ;;  %s1605_s3 = sld [smem:[#allocation23_spill]] }
  0x17   : > { %p887_p4 = pneg %p1351_p3  ;;  %s1253_s26 = smov 128  }
  0x18   : > { %s1254_s27 = smov 8   ;;  %s1255_s28 = smov [#allocation7]  }
  0x19   : > { %p1359_p5 = pnand %p887_p4, %p66_p1  ;;  %s316_s29 = sshll.u32 %s1255_s28, 4  ;;  %s317_s29 = int_to_ptr.vmem [resolvable:$true] %s316_s29 }
  0x1a   : > { %s297_s18 = sshll.u32 %s1602_s1, 4  ;;  %s1606_s5 = sld [smem:[#allocation25_spill]]  ;;  %s298_s18 = int_to_ptr.hbm [resolvable:$true] %s297_s18 }
  0x1b   : > { %890 = dma.hbm_to_vmem [thread:$0]  (!%p1359_p5), %s298_s18, 512, %s300_s21, [#allocation6], %s1253_s26, %s1253_s26, %s1254_s27  }
  0x1c   : > { %s314_s25 = sshll.u32 %s1605_s3, 4  ;;  %s1256_s23 = smov [#allocation8]   ;;  %s315_s25 = int_to_ptr.hbm [resolvable:$true] %s314_s25 }
  0x1d   : > { %893 = dma.hbm_to_vmem [thread:$0]  (!%p1359_p5), %s315_s25, 512, %s317_s29, [#allocation6], %s1253_s26, %s1253_s26, %s1254_s27  }
  0x1e   : > { %s333_s24 = sshll.u32 %s1256_s23, 4  ;;  %s1593_s18 = sadd.s32 4294967294, %s1250_s14   ;;  %s334_s24 = int_to_ptr.vmem [resolvable:$true] %s333_s24 }
  0x1f   : > { %s43_s21 = sadd.s32 1, %s1246_s13  ;;  %s52_s28 = sadd.s32 1, %s1238_s11 }
  0x20   : > { %s331_s20 = sshll.u32 %s1606_s5, 4  ;;  %p45_p7 = scmp.ge.s32.totalorder %s43_s21, 2  ;;  %s332_s20 = int_to_ptr.hbm [resolvable:$true] %s331_s20 }
  0x21   : > { %896 = dma.hbm_to_vmem [thread:$0]  (!%p1359_p5), %s332_s20, 512, %s334_s24, [#allocation9], %s1253_s26, %s1253_s26, %s1254_s27  }
  0x22   : > { %p59_p8 = scmp.ne.s32.totalorder %s1238_s11, %s1234_s10  ;;  %p60_p9 = scmp.eq.s32.totalorder %s1250_s14, 0 }
  0x23   : > { %p65_p10 = scmp.ne.s32.totalorder %s1234_s10, %s1230_s30  ;;  %s1624_s21 = smov (%p45_p7, %s43_s21), 0 }
  0x24   : > { %1607 = sst [smem:[#allocation19_spill]] %s1624_s21  ;;  %p1386_p11 = por %p60_p9, %p59_p8 }
  0x25   : > { %p1392_p12 = por %p66_p1, %p65_p10  ;;  %s47_s26 = ssub.s32 %s1246_s13, %s1624_s21 }
  0x26   : > { %p217_p13 = scmp.eq.s32.totalorder %s1343_s15, 1  ;;  %p50_p0 = scmp.eq.s32.totalorder %s47_s26, 0 }
  0x27   : > { %p223_p2 = scmp.eq.s32.totalorder %s1593_s18, 1  ;;  %p914_p5 = scmp.lt.s32.totalorder %s1250_s14, 2 }
  0x28   : > { %p1401_p4 = por %p217_p13, %p59_p8  ;;  %s350_s17 = sand.u32 1, %s1238_s11  }
  0x29   : > { %s1407_s29 = scalar_select %p50_p0, %s1238_s11, %s52_s28  }
  0x2a   : > { %p1409_p7 = por %p223_p2, %p65_p10  ;;  %s831_s20 = sshll.u32 %s350_s17, 3 }
  0x2b   : > { %s832_s23 = sshll.u32 %s1246_s13, 3  ;;  %s1612_s0 = sld [smem:[#allocation20_spill]] }
  0x2c   : > { %s354_s3 = scalar_lea.vmem [#allocation2], %s831_s20  ;;  %p898_p8 = pnand %p914_p5, %p1386_p11 }
  0x2d   : > { %s363_s18 = sshll.u32 %s354_s3, 4  ;;  %s351_s28 = scalar_lea.sflag [#allocation3], %s350_s17  ;;  %s364_s18 = int_to_ptr.vmem [resolvable:$true] %s363_s18 }
  0x2e   : > { %s1423_s21 = sand.u32 (!%p1351_p3), 1, %s1234_s10  }
  0x2f   : > { %372 = sbr.rel (%p1351_p3) target bundleno = 348 (0x15c), region = 48  ;;  %s834_s1 = sshll.u32 (!%p1351_p3), %s1423_s21, 3 }
  0x30   : > { %s378_s20 = scalar_lea.vmem (!%p1351_p3), [#allocation2], %s834_s1 }
  0x31   : > { %s359_s26 = scalar_lea.hbm %s1612_s0, %s832_s23  ;;  %s375_s23 = scalar_lea.sflag (!%p1351_p3), [#allocation3], %s1423_s21 }
  0x32   : > { %s361_s5 = sshll.u32 %s359_s26, 4  ;;  %s362_s5 = int_to_ptr.hbm [resolvable:$true] %s361_s5 }
  0x33   : > { %900 = dma.hbm_to_vmem [thread:$0]  (!%p898_p8), %s362_s5, 128, %s364_s18, %s351_s28  }
  0x34   : > { %1209 = dma.done.wait (%p1392_p12), %s375_s23, 128  }
  0x35   : > { %1211 = vsyncadd (%p1392_p12), %s375_s23, 4294967168 }
  0x36   : > { %1213 = dma.done.wait (%p66_p1), [#allocation6], 1024  }
  0x37   : > { %1215 = vsyncadd (%p66_p1), [#allocation6], 4294966272 }
  0x38   : > { %1217 = dma.done.wait (%p66_p1), [#allocation9], 512  }
  0x39   : > { %1219 = vsyncadd (%p66_p1), [#allocation9], 4294966784  ;;  %v443_v0 = vld [vmem:[#allocation5 + $0x18] sm:$0xff]  ;;  %v442_v2 = vld [vmem:[#allocation5 + $0x10] sm:$0xff]  ;;  %vm448_vm0 = vcmask 261120   ;;  %s838_s3 = sshll.u32 %s1423_s21, 5 }
  0x3a   : > { %v476_v1 = vld [vmem:[#allocation7 + $0x18] sm:$0xff]  ;;  %464 = vmatpush.msra.mxu0 %v443_v0  ;;  %v475_v3 = vld [vmem:[#allocation7 + $0x10] sm:$0xff]  ;;  %v441_v4 = vld [vmem:[#allocation5 + $0x8] sm:$0xff]  ;;  %s1613_s2 = sld [smem:[#allocation22_spill]]  ;;  %vm529_vm1 = vcmask 64512   ;;  %s1446_s22 = scalar_lea.vmem [#allocation11], %s838_s3 }
  0x3b   : > { %493 = vmatpush.msra.mxu1 %v476_v1  ;;  %v474_v5 = vld [vmem:[#allocation7 + $0x8] sm:$0xff]  ;;  %v504_v6 = vld [vmem:[#allocation8 + $0x18] sm:$0xff]  ;;  %v503_v7 = vld [vmem:[#allocation8 + $0x10] sm:$0xff]  ;;  %s1614_s4 = sld [smem:[#allocation24_spill]]  ;;  %s1257_s17 = smov 104  }
  0x3c   : > { %465 = vmatpush.msra.mxu0 %v442_v2  ;;  %521 = vmatpush.msra.mxu2 %v504_v6  ;;  %v440_v8 = vld [vmem:[#allocation5] sm:$0xff]  ;;  %v439_v10 = vld [vmem:[%s378_s20] sm:$0xff]  ;;  %v502_v11 = vld [vmem:[#allocation8 + $0x8] sm:$0xff]  ;;  %s1258_s24 = smov 120   ;;  %s1450_s26 = scalar_lea.vmem [#allocation10], %s838_s3 }
  0x3d   : > { %494 = vmatpush.msra.mxu1 %v475_v3  ;;  %v473_v9 = vld [vmem:[#allocation7] sm:$0xff]  ;;  %s1259_s28 = smov 112   ;;  %s1615_s6 = sld [smem:[#allocation26_spill]] }
  0x3e   : > { %466 = vmatpush.msra.mxu0 %v441_v4  ;;  %522 = vmatpush.msra.mxu2 %v503_v7  ;;  %v501_v12 = vld [vmem:[#allocation8] sm:$0xff]  ;;  %s1457_s20 = scalar_lea.vmem [#allocation13], %s838_s3  ;;  %s1468_s3 = sshll.u32 %s1242_s12, 5 }
  0x3f   : > { %495 = vmatpush.msra.mxu1 %v474_v5  ;;  %s622_s18 = scalar_lea.hbm %s1591_s8, %s1468_s3  ;;  %s623_s25 = sshll.u32 %s1446_s22, 4  ;;  %s624_s25 = int_to_ptr.vmem [resolvable:$true] %s623_s25 }
  0x40   : > { %467 = vmatpush.msra.mxu0 %v440_v8  ;;  %523 = vmatpush.msra.mxu2 %v502_v11  ;;  %v977_v13 = vld [vmem:[%s1613_s2] ss:$0 sm:$0xff]  ;;  %s640_s1 = scalar_lea.hbm %s1592_s9, %s1468_s3  ;;  %s604_s19 = scalar_lea.hbm %s1590_s7, %s1468_s3 }
  0x41   : > { %496 = vmatpush.msra.mxu1 %v473_v9  ;;  %841 = vmatmul.msk.f32.vlgmr.msra.gmra.mxu0 %vm448_vm0, %v439_v10  ;;  %v978_v14 = vld [vmem:[%s1614_s4] ss:$0 sm:$0xff]  ;;  %s1120_s4 = scalar_lea.hbm %s1591_s8, 64 }
  0x42   : > { %842 = vmatmul.msk.f32.vlgmr.msra.gmra.mxu1 %vm448_vm0, %v439_v10  ;;  %524 = vmatpush.msra.mxu2 %v501_v12 }
  0x43   : > { %843 = vmatmul.msk.f32.vlgmr.msra.gmra.mxu2 %vm448_vm0, %v439_v10  ;;  %v979_v20 = vld [vmem:[%s1615_s6] ss:$0 sm:$0xff] }
  0xbe   : > { %v469_v15 = vpop.f32.mrf.mxu0 }
  0xbf   : > { %v498_v16 = vpop.f32.mrf.mxu1  ;;  %v470_v17 = vadd.f32 %v977_v13, %v469_v15 }
  0xc0   : > { %v499_v18 = vadd.f32 %v978_v14, %v498_v16 }
  0xc1   : > { %v472_v19 = vmul.f32 0.35355338, %v470_v17 }
  0xc2   : > { %531 = vst.msk [vmem:[%s1446_s22] sm:$0xff] %vm529_vm1, %v499_v18  ;;  %571 = vrot.lane.b32.xlu1 %v499_v18, %s1257_s17  ;;  %540 = vrot.lane.b32.xlu0 %v499_v18, %s1258_s24 }
  0xc3   : > { %530 = vst.msk [vmem:[%s1450_s26] sm:$0xff] %vm529_vm1, %v472_v19  ;;  %551 = vrot.lane.b32.xlu2 %v472_v19, %s1259_s28 }
  0xc6   : > { %v526_v21 = vpop.f32.mrf.mxu2 }
  0xc7   : > { %v527_v22 = vadd.f32 %v979_v20, %v526_v21 }
  0xc9   : > { %532 = vst.msk [vmem:[%s1457_s20] sm:$0xff] %vm529_vm1, %v527_v22 }
  0xca   : > { %556 = vrot.lane.b32.xlu0 %v499_v18, %s1259_s28  ;;  %534 = vrot.lane.b32.xlu1 %v472_v19, %s1258_s24 }
  0xcb   : > { %546 = vrot.lane.b32.xlu2 %v527_v22, %s1258_s24  ;;  %s1480_s24 = sshll.u32 %s622_s18, 4  ;;  %s626_s24 = int_to_ptr.hbm [resolvable:$true] %s1480_s24 }
  0xcc   : > { %s1114_s18 = sshra.s32 %s626_s24, 4  ;;  %s1115_s18 = int_to_ptr.hbm [resolvable:$true] %s1114_s18 }
  0xcd   : > { %s1116_s0 = scalar_lea.hbm %s1115_s18, 32  ;;  %p1121_p10 = scmp.lt.s32.totalorder %s1115_s18, %s1591_s8 }
  0xce   : > { %p1117_p1 = scmp.ne.s32.totalorder %s1115_s18, %s1116_s0  ;;  %p1122_p11 = scmp.lt.s32.totalorder %s1120_s4, %s1116_s0 }
  0xd0   : > { %p1118_p3 = pnand %p1117_p1, %p1401_p4  ;;  %p1123_p12 = por %p1122_p11, %p1121_p10 }
  0xd2   : > { %561 = vrot.lane.b32.xlu0 %v527_v22, %s1259_s28  ;;  %566 = vrot.lane.b32.xlu1 %v472_v19, %s1257_s17  ;;  %p1119_p9 = pneg %p1118_p3 }
  0xd3   : > { %576 = vrot.lane.b32.xlu2 %v527_v22, %s1257_s17  ;;  %s586_s17 = sand.u32 1, %s1343_s15  }
  0xd4   : > { %s1495_s15 = scalar_lea.sflag [#allocation12], %s586_s17  ;;  %p1124_p13 = pnand %p1123_p12, %p1119_p9 }
 0x11d   : > { %v552_v23 = vpop.permute.xlu2 %551 }
 0x11e   : > { %847 = vst.msk [vmem:[%s1450_s26 + $0x10] sm:$0xff] %vm529_vm1, %v552_v23 }
 0x125   : > { %v547_v24 = vpop.permute.xlu2 %546 }
 0x126   : > { %846 = vst.msk [vmem:[%s1457_s20 + $0x8] sm:$0xff] %vm529_vm1, %v547_v24 }
 0x12d   : > { %v577_v25 = vpop.permute.xlu2 %576 }
 0x12e   : > { %852 = vst.msk [vmem:[%s1457_s20 + $0x18] sm:$0xff] %vm529_vm1, %v577_v25 }
 0x134   : > { %v572_v26 = vpop.permute.xlu1 %571  ;;  %v541_v27 = vpop.permute.xlu0 %540 }
 0x135   : > { %851 = vst.msk [vmem:[%s1446_s22 + $0x18] sm:$0xff] %vm529_vm1, %v572_v26 }
 0x136   : > { %845 = vst.msk [vmem:[%s1446_s22 + $0x8] sm:$0xff] %vm529_vm1, %v541_v27 }
 0x13c   : > { %v557_v28 = vpop.permute.xlu0 %556  ;;  %v535_v29 = vpop.permute.xlu1 %534 }
 0x13d   : > { %848 = vst.msk [vmem:[%s1446_s22 + $0x10] sm:$0xff] %vm529_vm1, %v557_v28 }
 0x13e   : > { %844 = vst.msk [vmem:[%s1450_s26 + $0x8] sm:$0xff] %vm529_vm1, %v535_v29 }
 0x13f   : > { %1127 = shalt.err (!%p1124_p13)
}
 0x140   : > { %s1260_s3 = smov 128   ;;  %s1261_s17 = smov 8  }
 0x141   : > { %882 = dma.vmem_to_hbm [thread:$0]  (%p1401_p4), %s624_s25, 512, %s626_s24, %s1495_s15, %s1260_s3, %s1260_s3, %s1261_s17  }
 0x142   : > { %s605_s2 = sshll.u32 %s1450_s26, 4  ;;  %s1512_s6 = sshll.u32 %s604_s19, 4  ;;  %s606_s2 = int_to_ptr.vmem [resolvable:$true] %s605_s2  ;;  %s608_s6 = int_to_ptr.hbm [resolvable:$true] %s1512_s6 }
 0x143   : > { %s641_s0 = sshll.u32 %s1457_s20, 4  ;;  %s1515_s4 = sshll.u32 %s640_s1, 4  ;;  %s1518_s0 = int_to_ptr.vmem [resolvable:$true] %s641_s0  ;;  %s644_s4 = int_to_ptr.hbm [resolvable:$true] %s1515_s4 }
 0x144   : > { %v562_v30 = vpop.permute.xlu0 %561  ;;  %v567_v31 = vpop.permute.xlu1 %566  ;;  %s582_s25 = scalar_lea.sflag [#allocation4], %s1423_s21  ;;  %s1142_s24 = sshra.s32 %s608_s6, 4  ;;  %s1143_s24 = int_to_ptr.hbm [resolvable:$true] %s1142_s24 }
 0x145   : > { %849 = vst.msk [vmem:[%s1457_s20 + $0x10] sm:$0xff] %vm529_vm1, %v562_v30  ;;  %s1144_s28 = scalar_lea.hbm %s1143_s24, 32  ;;  %s1148_s5 = scalar_lea.hbm %s1590_s7, 64 }
 0x146   : > { %850 = vst.msk [vmem:[%s1450_s26 + $0x18] sm:$0xff] %vm529_vm1, %v567_v31  ;;  %p1145_p0 = scmp.ne.s32.totalorder %s1143_s24, %s1144_s28  ;;  %p1149_p8 = scmp.lt.s32.totalorder %s1143_s24, %s1590_s7 }
 0x147   : > { %p1150_p1 = scmp.lt.s32.totalorder %s1148_s5, %s1144_s28 }
 0x148   : > { %p1146_p2 = pnand %p1145_p0, %p1401_p4 }
 0x149   : > { %p1151_p3 = por %p1150_p1, %p1149_p8 }
 0x14a   : > { %p1147_p5 = pneg %p1146_p2 }
 0x14c   : > { %p1152_p9 = pnand %p1151_p3, %p1147_p5 }
 0x14e   : > { %1155 = shalt.err (!%p1152_p9)
}
 0x14f   : > { %881 = dma.vmem_to_hbm [thread:$0]  (%p1401_p4), %s606_s2, 512, %s608_s6, %s582_s25, %s1260_s3, %s1260_s3, %s1261_s17  }
 0x150   : > { %s1170_s21 = sshra.s32 %s644_s4, 4  ;;  %s1176_s12 = scalar_lea.hbm %s1592_s9, 64  ;;  %s1171_s21 = int_to_ptr.hbm [resolvable:$true] %s1170_s21 }
 0x151   : > { %s1172_s26 = scalar_lea.hbm %s1171_s21, 32  ;;  %p1177_p13 = scmp.lt.s32.totalorder %s1171_s21, %s1592_s9 }
 0x152   : > { %p1173_p10 = scmp.ne.s32.totalorder %s1171_s21, %s1172_s26  ;;  %p1178_p0 = scmp.lt.s32.totalorder %s1176_s12, %s1172_s26 }
 0x154   : > { %p1174_p11 = pnand %p1173_p10, %p1401_p4  ;;  %p1179_p2 = por %p1178_p0, %p1177_p13 }
 0x156   : > { %p1175_p12 = pneg %p1174_p11 }
 0x158   : > { %p1180_p5 = pnand %p1179_p2, %p1175_p12 }
 0x15a   : > { %1183 = shalt.err (!%p1180_p5)
}
 0x15b   : > { %883 = dma.vmem_to_hbm [thread:$0]  (%p1401_p4), %s1518_s0, 512, %s644_s4, %s1495_s15, %s1260_s3, %s1260_s3, %s1261_s17  }
 0x15c PF: > { %s658_s2 = sand.u32 1, %s1230_s30   ;;  %p902_p8 = pnand %p830_p6, %p1409_p7 }
 0x15d   : > { %s659_s6 = scalar_lea.sflag [#allocation4], %s658_s2 }
 0x15e   : > { %p903_p1 = pneg %p902_p8 }
 0x160   : > { %1221 = dma.done.wait (%p903_p1), %s659_s6, 512  }
 0x161   : > { %1223 = vsyncadd (%p903_p1), %s659_s6, 4294966784  ;;  %s1616_s27 = sadd.s32 4294967294, %s1250_s14  }
 0x162   : > { %s668_s25 = sand.u32 1, %s1616_s27  }
 0x163   : > { %s669_s1 = scalar_lea.sflag [#allocation12], %s668_s25 }
 0x164   : > { %1225 = dma.done.wait (%p903_p1), %s669_s1, 1024  }
 0x165   : > { %1227 = vsyncadd (%p903_p1), %s669_s1, 4294966272  ;;  %s31_s14 = sadd.s32 1, %s1250_s14   ;;  %s1617_s16 = sld [smem:[#allocation19_spill]] }
 0x166   : > { %p28_p4 = scmp.ge.s32.totalorder %s31_s14, 4   ;;  %s1618_s30 = smov %s1234_s10 }
 0x167   : > { %s1619_s10 = smov %s1238_s11  ;;  %s1620_s11 = smov %s1407_s29 }
 0x168   : > { %s1621_s12 = smov %s1246_s13  ;;  %30 = sbr.rel (!%p28_p4) target bundleno = 18 (0x12), region = 146 }
 0x16b   : > { %s1622_s13 = smov %s1617_s16 }
 0x16d   :  { %685 = vsyncpa [#allocation3], 1 }
 0x16e   :  { %687 = vsyncpa [#allocation3 + $0x1], 1 }
 0x16f   :  { %688 = vsyncpa [#allocation6], 1 }
 0x170   :  { %689 = vsyncpa [#allocation9], 1 }
 0x171   :  { %690 = vsyncpa [#allocation4], 1 }
 0x172   :  { %692 = vsyncpa [#allocation4 + $0x1], 1 }
 0x173   :  { %693 = vsyncpa [#allocation12], 1 }
 0x174   :  { %695 = vsyncpa [#allocation12 + $0x1], 1 }

</bundles_post_ra>
